<compile_context>
chip_gen: v5e
topology: v5e:2x2
jax: 0.10.0
libtpu: 0.0.40
codegen_flags: <defaults>
</compile_context>

<pallas_src>
import functools

import jax
import jax.numpy as jnp
from jax import lax
from jax.experimental import pallas as pl
from jax.experimental.pallas import tpu as pltpu

SCALE_WEIGHT = 0.5 ** 0.5


def _round_up(x, m):
    return (x + m - 1) // m * m


# ----------------------------------------------------------------------------
# Fused decoder kernel: grid = (num_batch_blocks, num_layers)
# ----------------------------------------------------------------------------
def _fused_decoder_kernel(
    emb_ref,       # (bt, Tp, Dp)       target embeddings, mxu_dtype
    w_lin_ref,     # (Dp, Cp)           input Linear weight (in, out), mxu_dtype
    b_lin_ref,     # (1, Cp)            f32
    enc_top_ref,   # (bt, Cp, Sp)       attention keys, mxu_dtype
    enc_cmb_ref,   # (bt, Sp, Cp)       attention values (transposed), mxu_dtype
    w_conv_ref,    # (width, Cp, 2Cp)   this layer's conv weight, mxu_dtype
    b_conv_ref,    # (1, 2Cp)           f32
    w_in_ref,      # (Cp, Cp)           attention linear_in (in, out), mxu_dtype
    b_in_ref,      # (1, Cp)            f32
    x_out_ref,     # (bt, Tp, Cp)       f32
    attn_out_ref,  # (bt, Tp, Sp)       bf16
    x_sc,          # VMEM (bt*Tp, Cp) f32 : running decoder state
    base_sc,       # VMEM (bt*Tp, Cp) f32 : base_target_emb
    *, width, s_valid, mxu_dtype,
):
    l = pl.program_id(1)
    nl = pl.num_programs(1)

    bt, tp, dp = emb_ref.shape
    cp = w_lin_ref.shape[1]
    sp = enc_top_ref.shape[2]
    m = bt * tp

    # ---- layer 0: fused input Linear, initialise resident state -------------
    @pl.when(l == 0)
    def _init():
        emb = emb_ref[...].reshape(m, dp)
        base = (
            jnp.dot(emb, w_lin_ref[...], preferred_element_type=jnp.float32)
            + b_lin_ref[...]
        )
        base_sc[...] = base
        x_sc[...] = base

    x = x_sc[...]                                   # (m, cp) f32

    # ---- GatedConv: causal conv as `width` accumulated MXU dots --------------
    # Tap w uses x shifted down by s = width-1-w rows *within each sequence*
    # (zeros above).  Shift via pltpu.roll (XLU) + an (m, 1) per-row causal mask
    # (rows wrapped across sequence boundaries are zeroed).
    local_t = lax.broadcasted_iota(jnp.int32, (m, 1), 0) % tp      # (m, 1)

    h = jnp.dot(x.astype(mxu_dtype), w_conv_ref[width - 1],
                preferred_element_type=jnp.float32)                # tap shift 0
    for w in range(width - 1):
        s = width - 1 - w
        shifted = pltpu.roll(x, shift=s, axis=0)
        tap = jnp.where(local_t >= s, shifted, 0.0)
        h = h + jnp.dot(tap.astype(mxu_dtype), w_conv_ref[w],
                        preferred_element_type=jnp.float32)
    h = h + b_conv_ref[...]                                        # (m, 2*cp)
    out = h[:, :cp] * jax.nn.sigmoid(h[:, cp:])                    # GLU, (m, cp)

    # ---- ConvMultiStepAttention ----------------------------------------------
    preatt = (
        jnp.dot(out.astype(mxu_dtype), w_in_ref[...],
                preferred_element_type=jnp.float32)
        + b_in_ref[...]
    )
    target = (base_sc[...] + preatt) * SCALE_WEIGHT                # (m, cp) f32
    target_b = target.reshape(bt, tp, cp).astype(mxu_dtype)

    pre_attn = jnp.einsum("btc,bcs->bts", target_b, enc_top_ref[...],
                          preferred_element_type=jnp.float32)      # (bt, tp, sp)

    # Mask padded source columns before softmax (statically skipped if S == Sp):
    # one additive pass with a (1, 1, sp) bias instead of full-size iota+cmp+sel.
    if s_valid < sp:
        col = lax.broadcasted_iota(jnp.int32, (1, 1, sp), 2)
        pre_attn = pre_attn + jnp.where(col < s_valid, 0.0, -1e30)

    mmax = jnp.max(pre_attn, axis=-1, keepdims=True)
    e = jnp.exp(pre_attn - mmax)
    attn = e * pl.reciprocal(jnp.sum(e, axis=-1, keepdims=True), approx=True)

    ctx = jnp.einsum("bts,bsc->btc", attn.astype(mxu_dtype), enc_cmb_ref[...],
                     preferred_element_type=jnp.float32).reshape(m, cp)

    # ---- residual update: x = (x + (c + out) * s) * s ------------------------
    x_new = (x + (ctx + out) * SCALE_WEIGHT) * SCALE_WEIGHT
    x_sc[...] = x_new

    # Only the last layer's x / attn are returned by the module.
    @pl.when(l == nl - 1)
    def _finalize():
        x_out_ref[...] = x_new.reshape(bt, tp, cp).astype(x_out_ref.dtype)
        attn_out_ref[...] = attn.astype(attn_out_ref.dtype)


# ----------------------------------------------------------------------------
# Wrapper: padding / dtype casting / weight stacking / pallas_call plumbing
# ----------------------------------------------------------------------------
def _default_batch_tile(B):
    # v7x has 2 TensorCores per chip: split the batch across the "parallel"
    # grid axis so both cores get work.  Single-TC chips (v5e/v6e) keep the
    # whole batch in one block so the flattened matmul M dim stays maximal.
    # Detection is best-effort; fall back to bt = B.
    try:
        n_tc = int(getattr(jax.devices()[0], "num_cores", 1) or 1)
    except Exception:
        n_tc = 1
    if n_tc > 1 and B % n_tc == 0:
        return B // n_tc
    return B


def conv_decoder_forward(params, target_emb, encoder_out_top, encoder_out_combine,
                         *, batch_tile=None, mxu_dtype=jnp.bfloat16,
                         vmem_limit_bytes=48 * 1024 * 1024):
    """target_emb: (B, T, input_size); encoder_out_*: (B, C, S) (PyTorch conv layout)."""
    B, T, D = target_emb.shape
    C = params["w_lin"].shape[1]
    S = encoder_out_top.shape[-1]
    L = len(params["layers"])
    width = params["layers"][0]["w_conv"].shape[0]

    # Pad to TPU-friendly shapes: lane dims -> multiples of 128, time -> 8.
    Tp, Dp, Cp, Sp = _round_up(T, 8), _round_up(D, 128), _round_up(C, 128), _round_up(S, 128)

    bt = _default_batch_tile(B) if batch_tile is None else batch_tile
    assert B % bt == 0, "batch_tile must divide the batch"

    f32 = jnp.float32

    def pad(a, shape, dtype):
        z = jnp.zeros(shape, f32).at[tuple(slice(0, s) for s in a.shape)].set(a.astype(f32))
        return z.astype(dtype)

    # MXU operands pre-cast to mxu_dtype (bf16 by default); biases stay f32.
    emb_p = pad(target_emb, (B, Tp, Dp), mxu_dtype)
    w_lin_p = pad(params["w_lin"], (Dp, Cp), mxu_dtype)
    b_lin_p = pad(params["b_lin"], (1, Cp), f32)
    enc_top_p = pad(encoder_out_top, (B, Cp, Sp), mxu_dtype)
    enc_cmb_p = pad(jnp.transpose(encoder_out_combine, (0, 2, 1)), (B, Sp, Cp), mxu_dtype)

    # Stack per-layer weights (layer axis first) with padded channels.  The GLU
    # halves are padded separately so "out" stays in [:Cp] and "gate" in [Cp:].
    w_conv_l, b_conv_l, w_in_l, b_in_l = [], [], [], []
    for lyr in params["layers"]:
        wc = lyr["w_conv"]                                        # (width, C, 2C)
        wc_p = jnp.concatenate(
            [pad(wc[..., :C], (width, Cp, Cp), mxu_dtype),
             pad(wc[..., C:], (width, Cp, Cp), mxu_dtype)],
            axis=-1)                                              # (width, Cp, 2Cp)
        w_conv_l.append(wc_p)
        bc = lyr["b_conv"]                                        # (1, 2C)
        b_conv_l.append(jnp.concatenate(
            [pad(bc[:, :C], (1, Cp), f32), pad(bc[:, C:], (1, Cp), f32)], axis=-1))
        w_in_l.append(pad(lyr["w_in"], (Cp, Cp), mxu_dtype))
        b_in_l.append(pad(lyr["b_in"], (1, Cp), f32))
    w_conv_all = jnp.stack(w_conv_l)                              # (L, width, Cp, 2Cp)
    b_conv_all = jnp.stack(b_conv_l)                              # (L, 1, 2Cp)
    w_in_all = jnp.stack(w_in_l)                                  # (L, Cp, Cp)
    b_in_all = jnp.stack(b_in_l)                                  # (L, 1, Cp)

    kernel = functools.partial(
        _fused_decoder_kernel, width=width, s_valid=S, mxu_dtype=mxu_dtype)

    def run(single_buffer_invariants):
        # Layer-invariant blocks (index never changes along the layer axis) only
        # need a single pipeline buffer; per-layer weights keep default
        # double-buffering so their DMA hides behind the previous layer's compute.
        inv = dict(pipeline_mode=pl.Buffered(1)) if single_buffer_invariants else {}
        in_specs = [
            pl.BlockSpec((bt, Tp, Dp), lambda b, l: (b, 0, 0), **inv),          # emb
            pl.BlockSpec((Dp, Cp), lambda b, l: (0, 0), **inv),                 # w_lin
            pl.BlockSpec((1, Cp), lambda b, l: (0, 0), **inv),                  # b_lin
            pl.BlockSpec((bt, Cp, Sp), lambda b, l: (b, 0, 0), **inv),          # enc_top
            pl.BlockSpec((bt, Sp, Cp), lambda b, l: (b, 0, 0), **inv),          # enc_comb^T
            pl.BlockSpec((None, width, Cp, 2 * Cp), lambda b, l: (l, 0, 0, 0)), # w_conv
            pl.BlockSpec((None, 1, 2 * Cp), lambda b, l: (l, 0, 0)),            # b_conv
            pl.BlockSpec((None, Cp, Cp), lambda b, l: (l, 0, 0)),               # w_in
            pl.BlockSpec((None, 1, Cp), lambda b, l: (l, 0, 0)),                # b_in
        ]
        return pl.pallas_call(
            kernel,
            grid=(B // bt, L),
            in_specs=in_specs,
            out_specs=[
                pl.BlockSpec((bt, Tp, Cp), lambda b, l: (b, 0, 0)),
                pl.BlockSpec((bt, Tp, Sp), lambda b, l: (b, 0, 0)),
            ],
            out_shape=[
                jax.ShapeDtypeStruct((B, Tp, Cp), jnp.float32),
                jax.ShapeDtypeStruct((B, Tp, Sp), jnp.bfloat16),   # bf16 writeback
            ],
            scratch_shapes=[
                pltpu.VMEM((bt * Tp, Cp), jnp.float32),   # x (running state)
                pltpu.VMEM((bt * Tp, Cp), jnp.float32),   # base_target_emb
            ],
            compiler_params=pltpu.CompilerParams(
                dimension_semantics=("parallel", "arbitrary"),
                vmem_limit_bytes=vmem_limit_bytes),
        )(emb_p, w_lin_p, b_lin_p, enc_top_p, enc_cmb_p,
          w_conv_all, b_conv_all, w_in_all, b_in_all)

    try:
        x_p, attn_p = run(True)
    except Exception:
        # pl.Buffered(1) not accepted by this jax/Mosaic build: fall back to
        # default double-buffering (only costs VMEM, not correctness/speed here).
        x_p, attn_p = run(False)

    # PyTorch returns x.squeeze(3).transpose(1, 2) == (B, T, C): already our layout.
    return x_p[:, :T, :C], attn_p[:, :T, :S].astype(jnp.float32)


# ----------------------------------------------------------------------------
# Pure-JAX reference (for correctness check)
# ----------------------------------------------------------------------------
def conv_decoder_reference(params, target_emb, encoder_out_top, encoder_out_combine):
    hp = functools.partial(jnp.einsum, precision=jax.lax.Precision.HIGHEST)
    x = hp("btd,dh->bth", target_emb, params["w_lin"]) + params["b_lin"]
    base = x
    attn = None
    for layer in params["layers"]:
        width = layer["w_conv"].shape[0]
        T = x.shape[1]
        xp = jnp.pad(x, ((0, 0), (width - 1, 0), (0, 0)))
        h = sum(
            hp("btc,co->bto", xp[:, w:w + T], layer["w_conv"][w])
            for w in range(width)
        ) + layer["b_conv"]
        C = x.shape[-1]
        out = h[..., :C] * jax.nn.sigmoid(h[..., C:])
        preatt = hp("btc,co->bto", out, layer["w_in"]) + layer["b_in"]
        target = (base + preatt) * SCALE_WEIGHT
        pre_attn = hp("btc,bcs->bts", target, encoder_out_top)
        attn = jax.nn.softmax(pre_attn, axis=-1)
        ctx = hp("bts,bcs->btc", attn, encoder_out_combine)
        x = (x + (ctx + out) * SCALE_WEIGHT) * SCALE_WEIGHT
    return x, attn


# ----------------------------------------------------------------------------
# Deterministic parameter construction
# ----------------------------------------------------------------------------
def make_params(key, input_size, hidden, num_layers, width):
    ks = jax.random.split(key, 2 + 4 * num_layers)
    params = {
        # nn.Linear(input_size, hidden): stored as (in, out) + (1, out)
        "w_lin": 0.1 * jax.random.normal(ks[0], (input_size, hidden), jnp.float32),
        "b_lin": 0.1 * jax.random.normal(ks[1], (1, hidden), jnp.float32),
        "layers": [],
    }
    for i in range(num_layers):
        k0, k1, k2, k3 = ks[2 + 4 * i: 6 + 4 * i]
        params["layers"].append({
            # WeightNormConv2d(hidden, 2*hidden, (width,1)) effective weight,
            # laid out per tap as (width, C_in, 2*C_out).
            "w_conv": 0.1 * jax.random.normal(k0, (width, hidden, 2 * hidden), jnp.float32),
            "b_conv": 0.1 * jax.random.normal(k1, (1, 2 * hidden), jnp.float32),
            # ConvMultiStepAttention.linear_in (hidden -> hidden), (in, out).
            "w_in": 0.1 * jax.random.normal(k2, (hidden, hidden), jnp.float32),
            "b_in": 0.1 * jax.random.normal(k3, (1, hidden), jnp.float32),
        })
    return params


if __name__ == "__main__":
    B, T, S = 2, 8, 16          # batch, target length, source length
    input_size, hidden = 24, 32
    num_layers, width = 2, 3
    dropout = 0.2               # eval mode -> identity
    # TODO(synk): training-mode dropout is intentionally not implemented (inference forward).

    key = jax.random.PRNGKey(0)
    k_par, k_emb, k_top, k_cmb = jax.random.split(key, 4)
    params = make_params(k_par, input_size, hidden, num_layers, width)

    target_emb = jax.random.normal(k_emb, (B, T, input_size), jnp.float32)
    encoder_out_top = jax.random.normal(k_top, (B, hidden, S), jnp.float32)
    encoder_out_combine = jax.random.normal(k_cmb, (B, hidden, S), jnp.float32)

    x_out, attn_out = conv_decoder_forward(
        params, target_emb, encoder_out_top, encoder_out_combine
    )
    jax.block_until_ready((x_out, attn_out))

    x_ref, attn_ref = conv_decoder_reference(
        params, target_emb, encoder_out_top, encoder_out_combine
    )
    assert x_out.shape == (B, T, hidden) and attn_out.shape == (B, T, S)
    assert bool(jnp.all(jnp.isfinite(x_out))) and bool(jnp.all(jnp.isfinite(attn_out)))
    # bf16 MXU operands + bf16 attn writeback vs. an f32 HIGHEST-precision
    # reference: observed errors are ~1e-2 absolute worst-case at these shapes.
    assert jnp.allclose(x_out, x_ref, rtol=3e-2, atol=3e-2)
    assert jnp.allclose(attn_out, attn_ref, rtol=3e-2, atol=3e-2)

    print("KERNEL_OK")
</pallas_src>

<mosaic_0001>
module attributes {stable_mosaic.version = 11 : i64} {
  func.func @_fused_decoder_kernel(%arg0: i32, %arg1: i32, %arg2: memref<2x8x128xbf16, #tpu.memory_space<vmem>>, %arg3: memref<128x128xbf16, #tpu.memory_space<vmem>>, %arg4: memref<1x128xf32, #tpu.memory_space<vmem>>, %arg5: memref<2x128x128xbf16, #tpu.memory_space<vmem>>, %arg6: memref<2x128x128xbf16, #tpu.memory_space<vmem>>, %arg7: memref<1x3x128x256xbf16, #tpu.memory_space<vmem>>, %arg8: memref<1x1x256xf32, #tpu.memory_space<vmem>>, %arg9: memref<1x128x128xbf16, #tpu.memory_space<vmem>>, %arg10: memref<1x1x128xf32, #tpu.memory_space<vmem>>, %arg11: memref<2x8x128xf32, #tpu.memory_space<vmem>>, %arg12: memref<2x8x128xbf16, #tpu.memory_space<vmem>>, %arg13: memref<16x128xf32, #tpu.memory_space<vmem>>, %arg14: memref<16x128xf32, #tpu.memory_space<vmem>>) attributes {dimension_semantics = [#tpu.dimension_semantics<parallel>, #tpu.dimension_semantics<arbitrary>], iteration_bounds = array<i64: 1, 2>, scalar_prefetch = 0 : i64, scratch_operands = 2 : i64, tpu.core_type = #tpu.core_type<tc>, window_params = [{pipeline_mode = #tpu.pipeline_mode<synchronous>, transform_indices = @transform_0, window_bounds = array<i64: 2, 8, 128>}, {pipeline_mode = #tpu.pipeline_mode<synchronous>, transform_indices = @transform_1, window_bounds = array<i64: 128, 128>}, {pipeline_mode = #tpu.pipeline_mode<synchronous>, transform_indices = @transform_2, window_bounds = array<i64: 1, 128>}, {pipeline_mode = #tpu.pipeline_mode<synchronous>, transform_indices = @transform_3, window_bounds = array<i64: 2, 128, 128>}, {pipeline_mode = #tpu.pipeline_mode<synchronous>, transform_indices = @transform_4, window_bounds = array<i64: 2, 128, 128>}, {transform_indices = @transform_5, window_bounds = array<i64: 1, 3, 128, 256>}, {transform_indices = @transform_6, window_bounds = array<i64: 1, 1, 256>}, {transform_indices = @transform_7, window_bounds = array<i64: 1, 128, 128>}, {transform_indices = @transform_8, window_bounds = array<i64: 1, 1, 128>}, {transform_indices = @transform_9, window_bounds = array<i64: 2, 8, 128>}, {transform_indices = @transform_10, window_bounds = array<i64: 2, 8, 128>}]} {
    %c0_i32 = arith.constant 0 : i32
    %0 = arith.cmpi eq, %arg1, %c0_i32 : i32
    %1 = arith.extui %0 : i1 to i32
    %c0_i32_0 = arith.constant 0 : i32
    %2 = arith.cmpi ne, %1, %c0_i32_0 : i32
    scf.if %2 {
      %c0_55 = arith.constant 0 : index
      %c0_56 = arith.constant 0 : index
      %c0_57 = arith.constant 0 : index
      %109 = vector.load %arg2[%c0_55, %c0_56, %c0_57] : memref<2x8x128xbf16, #tpu.memory_space<vmem>>, vector<2x8x128xbf16>
      %110 = vector.shape_cast %109 : vector<2x8x128xbf16> to vector<16x128xbf16>
      %c0_58 = arith.constant 0 : index
      %c0_59 = arith.constant 0 : index
      %111 = vector.load %arg3[%c0_58, %c0_59] : memref<128x128xbf16, #tpu.memory_space<vmem>>, vector<128x128xbf16>
      %cst_60 = arith.constant dense<0.000000e+00> : vector<16x128xf32>
      %112 = tpu.matmul %110, %111, %cst_60 {dimension_numbers = #tpu.dot_dimension_numbers<[1], [0], [0], [1], [0, 0, 1, 1], [], []>} : vector<16x128xbf16>, vector<128x128xbf16>, vector<16x128xf32> -> vector<16x128xf32>
      %c0_61 = arith.constant 0 : index
      %c0_62 = arith.constant 0 : index
      %113 = vector.load %arg4[%c0_61, %c0_62] : memref<1x128xf32, #tpu.memory_space<vmem>>, vector<1x128xf32>
      %114 = vector.broadcast %113 : vector<1x128xf32> to vector<16x128xf32>
      %115 = arith.addf %112, %114 : vector<16x128xf32>
      %c0_63 = arith.constant 0 : index
      %c0_64 = arith.constant 0 : index
      %116 = vector.load %arg14[%c0_63, %c0_64] : memref<16x128xf32, #tpu.memory_space<vmem>>, vector<16x128xf32>
      tpu.vector_store %arg14[%c0_63, %c0_64], %115 {strides = array<i32>} : memref<16x128xf32, #tpu.memory_space<vmem>>, vector<16x128xf32>,
      %c0_65 = arith.constant 0 : index
      %c0_66 = arith.constant 0 : index
      %117 = vector.load %arg13[%c0_65, %c0_66] : memref<16x128xf32, #tpu.memory_space<vmem>>, vector<16x128xf32>
      tpu.vector_store %arg13[%c0_65, %c0_66], %115 {strides = array<i32>} : memref<16x128xf32, #tpu.memory_space<vmem>>, vector<16x128xf32>,
    } else {
    }
    %c0 = arith.constant 0 : index
    %c0_1 = arith.constant 0 : index
    %3 = vector.load %arg13[%c0, %c0_1] : memref<16x128xf32, #tpu.memory_space<vmem>>, vector<16x128xf32>
    %4 = tpu.iota {dimensions = array<i32: 0>} : vector<16x1xi32>
    %c8_i32 = arith.constant 8 : i32
    %c0_i32_2 = arith.constant 0 : i32
    %5 = arith.cmpi eq, %c8_i32, %c0_i32_2 : i32
    %c1_i32 = arith.constant 1 : i32
    %6 = arith.select %5, %c1_i32, %c8_i32 : i32
    %7 = vector.broadcast %6 : i32 to vector<16x1xi32>
    %8 = arith.remsi %4, %7 : vector<16x1xi32>
    %c0_i32_3 = arith.constant 0 : i32
    %9 = vector.broadcast %c0_i32_3 : i32 to vector<16x1xi32>
    %10 = arith.cmpi ne, %8, %9 : vector<16x1xi32>
    %c0_i32_4 = arith.constant 0 : i32
    %11 = vector.broadcast %c0_i32_4 : i32 to vector<16x1xi32>
    %12 = arith.cmpi slt, %8, %11 : vector<16x1xi32>
    %c0_i32_5 = arith.constant 0 : i32
    %13 = arith.cmpi slt, %6, %c0_i32_5 : i32
    %14 = vector.broadcast %13 : i1 to vector<16x1xi1>
    %15 = vector.broadcast %14 : vector<16x1xi1> to vector<16x1xi1>
    %16 = arith.xori %12, %15 : vector<16x1xi1>
    %17 = arith.andi %16, %10 : vector<16x1xi1>
    %18 = vector.broadcast %6 : i32 to vector<16x1xi32>
    %19 = arith.addi %8, %18 : vector<16x1xi32>
    %20 = arith.select %17, %19, %8 : vector<16x1xi1>, vector<16x1xi32>
    %21 = arith.truncf %3 : vector<16x128xf32> to vector<16x128xbf16>
    %c0_6 = arith.constant 0 : index
    %c2 = arith.constant 2 : index
    %c0_7 = arith.constant 0 : index
    %c0_8 = arith.constant 0 : index
    %22 = vector.load %arg7[%c0_6, %c2, %c0_7, %c0_8] : memref<1x3x128x256xbf16, #tpu.memory_space<vmem>>, vector<1x1x128x256xbf16>
    %23 = vector.shape_cast %22 : vector<1x1x128x256xbf16> to vector<128x256xbf16>
    %cst = arith.constant dense<0.000000e+00> : vector<16x256xf32>
    %24 = tpu.matmul %21, %23, %cst {dimension_numbers = #tpu.dot_dimension_numbers<[1], [0], [0], [1], [0, 0, 1, 1], [], []>} : vector<16x128xbf16>, vector<128x256xbf16>, vector<16x256xf32> -> vector<16x256xf32>
    %c2_i32 = arith.constant 2 : i32
    %25 = tpu.dynamic_rotate %3 by %c2_i32 dim 0 : vector<16x128xf32>, i32 -> vector<16x128xf32>
    %c2_i32_9 = arith.constant 2 : i32
    %26 = vector.broadcast %c2_i32_9 : i32 to vector<16x1xi32>
    %27 = arith.cmpi sge, %20, %26 : vector<16x1xi32>
    %cst_10 = arith.constant 0.000000e+00 : f32
    %28 = vector.shape_cast %27 : vector<16x1xi1> to vector<16x1xi1>
    %29 = vector.broadcast %28 : vector<16x1xi1> to vector<16x128xi1>
    %30 = vector.broadcast %cst_10 : f32 to vector<16x128xf32>
    %31 = arith.select %29, %25, %30 : vector<16x128xi1>, vector<16x128xf32>
    %32 = arith.truncf %31 : vector<16x128xf32> to vector<16x128xbf16>
    %c0_11 = arith.constant 0 : index
    %c0_12 = arith.constant 0 : index
    %c0_13 = arith.constant 0 : index
    %c0_14 = arith.constant 0 : index
    %33 = vector.load %arg7[%c0_11, %c0_12, %c0_13, %c0_14] : memref<1x3x128x256xbf16, #tpu.memory_space<vmem>>, vector<1x1x128x256xbf16>
    %34 = vector.shape_cast %33 : vector<1x1x128x256xbf16> to vector<128x256xbf16>
    %cst_15 = arith.constant dense<0.000000e+00> : vector<16x256xf32>
    %35 = tpu.matmul %32, %34, %cst_15 {dimension_numbers = #tpu.dot_dimension_numbers<[1], [0], [0], [1], [0, 0, 1, 1], [], []>} : vector<16x128xbf16>, vector<128x256xbf16>, vector<16x256xf32> -> vector<16x256xf32>
    %36 = arith.addf %24, %35 : vector<16x256xf32>
    %c1_i32_16 = arith.constant 1 : i32
    %37 = tpu.dynamic_rotate %3 by %c1_i32_16 dim 0 : vector<16x128xf32>, i32 -> vector<16x128xf32>
    %c1_i32_17 = arith.constant 1 : i32
    %38 = vector.broadcast %c1_i32_17 : i32 to vector<16x1xi32>
    %39 = arith.cmpi sge, %20, %38 : vector<16x1xi32>
    %cst_18 = arith.constant 0.000000e+00 : f32
    %40 = vector.shape_cast %39 : vector<16x1xi1> to vector<16x1xi1>
    %41 = vector.broadcast %40 : vector<16x1xi1> to vector<16x128xi1>
    %42 = vector.broadcast %cst_18 : f32 to vector<16x128xf32>
    %43 = arith.select %41, %37, %42 : vector<16x128xi1>, vector<16x128xf32>
    %44 = arith.truncf %43 : vector<16x128xf32> to vector<16x128xbf16>
    %c0_19 = arith.constant 0 : index
    %c1 = arith.constant 1 : index
    %c0_20 = arith.constant 0 : index
    %c0_21 = arith.constant 0 : index
    %45 = vector.load %arg7[%c0_19, %c1, %c0_20, %c0_21] : memref<1x3x128x256xbf16, #tpu.memory_space<vmem>>, vector<1x1x128x256xbf16>
    %46 = vector.shape_cast %45 : vector<1x1x128x256xbf16> to vector<128x256xbf16>
    %cst_22 = arith.constant dense<0.000000e+00> : vector<16x256xf32>
    %47 = tpu.matmul %44, %46, %cst_22 {dimension_numbers = #tpu.dot_dimension_numbers<[1], [0], [0], [1], [0, 0, 1, 1], [], []>} : vector<16x128xbf16>, vector<128x256xbf16>, vector<16x256xf32> -> vector<16x256xf32>
    %48 = arith.addf %36, %47 : vector<16x256xf32>
    %c0_23 = arith.constant 0 : index
    %c0_24 = arith.constant 0 : index
    %c0_25 = arith.constant 0 : index
    %49 = vector.load %arg8[%c0_23, %c0_24, %c0_25] : memref<1x1x256xf32, #tpu.memory_space<vmem>>, vector<1x1x256xf32>
    %50 = vector.shape_cast %49 : vector<1x1x256xf32> to vector<1x256xf32>
    %51 = vector.broadcast %50 : vector<1x256xf32> to vector<16x256xf32>
    %52 = arith.addf %48, %51 : vector<16x256xf32>
    %53 = vector.extract_strided_slice %52 {offsets = [0, 0], sizes = [16, 128], strides = [1, 1]} : vector<16x256xf32> to vector<16x128xf32>
    %54 = vector.extract_strided_slice %52 {offsets = [0, 128], sizes = [16, 128], strides = [1, 1]} : vector<16x256xf32> to vector<16x128xf32>
    %55 = arith.negf %54 : vector<16x128xf32>
    %56 = math.exp %55 : vector<16x128xf32>
    %cst_26 = arith.constant 1.000000e+00 : f32
    %57 = vector.broadcast %cst_26 : f32 to vector<16x128xf32>
    %58 = arith.addf %57, %56 : vector<16x128xf32>
    %59 = arith.divf %57, %58 : vector<16x128xf32>
    %60 = arith.mulf %53, %59 : vector<16x128xf32>
    %61 = arith.truncf %60 : vector<16x128xf32> to vector<16x128xbf16>
    %c0_27 = arith.constant 0 : index
    %c0_28 = arith.constant 0 : index
    %c0_29 = arith.constant 0 : index
    %62 = vector.load %arg9[%c0_27, %c0_28, %c0_29] : memref<1x128x128xbf16, #tpu.memory_space<vmem>>, vector<1x128x128xbf16>
    %63 = vector.shape_cast %62 : vector<1x128x128xbf16> to vector<128x128xbf16>
    %cst_30 = arith.constant dense<0.000000e+00> : vector<16x128xf32>
    %64 = tpu.matmul %61, %63, %cst_30 {dimension_numbers = #tpu.dot_dimension_numbers<[1], [0], [0], [1], [0, 0, 1, 1], [], []>} : vector<16x128xbf16>, vector<128x128xbf16>, vector<16x128xf32> -> vector<16x128xf32>
    %c0_31 = arith.constant 0 : index
    %c0_32 = arith.constant 0 : index
    %c0_33 = arith.constant 0 : index
    %65 = vector.load %arg10[%c0_31, %c0_32, %c0_33] : memref<1x1x128xf32, #tpu.memory_space<vmem>>, vector<1x1x128xf32>
    %66 = vector.shape_cast %65 : vector<1x1x128xf32> to vector<1x128xf32>
    %67 = vector.broadcast %66 : vector<1x128xf32> to vector<16x128xf32>
    %68 = arith.addf %64, %67 : vector<16x128xf32>
    %c0_34 = arith.constant 0 : index
    %c0_35 = arith.constant 0 : index
    %69 = vector.load %arg14[%c0_34, %c0_35] : memref<16x128xf32, #tpu.memory_space<vmem>>, vector<16x128xf32>
    %70 = arith.addf %69, %68 : vector<16x128xf32>
    %cst_36 = arith.constant 0.707106769 : f32
    %71 = vector.broadcast %cst_36 : f32 to vector<16x128xf32>
    %72 = arith.mulf %70, %71 : vector<16x128xf32>
    %73 = vector.shape_cast %72 : vector<16x128xf32> to vector<2x8x128xf32>
    %74 = arith.truncf %73 : vector<2x8x128xf32> to vector<2x8x128xbf16>
    %c0_37 = arith.constant 0 : index
    %c0_38 = arith.constant 0 : index
    %c0_39 = arith.constant 0 : index
    %75 = vector.load %arg5[%c0_37, %c0_38, %c0_39] : memref<2x128x128xbf16, #tpu.memory_space<vmem>>, vector<2x128x128xbf16>
    "tpu.trace_start"() <{level = 10 : i32, message = "btc,bcs->bts"}> : () -> ()
    %cst_40 = arith.constant dense<0.000000e+00> : vector<2x8x128xf32>
    %76 = tpu.matmul %74, %75, %cst_40 {dimension_numbers = #tpu.dot_dimension_numbers<[2], [1], [1], [2], [0, 0, 0, 1, 1, 2], [0], [0]>} : vector<2x8x128xbf16>, vector<2x128x128xbf16>, vector<2x8x128xf32> -> vector<2x8x128xf32>
    "tpu.trace_stop"() : () -> ()
    %77 = tpu.iota {dimensions = array<i32: 2>} : vector<1x1x128xi32>
    %c16_i32 = arith.constant 16 : i32
    %78 = vector.broadcast %c16_i32 : i32 to vector<1x1x128xi32>
    %79 = arith.cmpi slt, %77, %78 : vector<1x1x128xi32>
    %cst_41 = arith.constant 0.000000e+00 : f32
    %cst_42 = arith.constant -1.000000e+30 : f32
    %80 = vector.broadcast %cst_41 : f32 to vector<1x1x128xf32>
    %81 = vector.broadcast %cst_42 : f32 to vector<1x1x128xf32>
    %82 = arith.select %79, %80, %81 : vector<1x1x128xi1>, vector<1x1x128xf32>
    %83 = vector.broadcast %82 : vector<1x1x128xf32> to vector<2x8x128xf32>
    %84 = arith.addf %76, %83 : vector<2x8x128xf32>
    %cst_43 = arith.constant dense<0xFF800000> : vector<2x8xf32>
    %85 = vector.multi_reduction <maximumf>, %84, %cst_43 [2] : vector<2x8x128xf32> to vector<2x8xf32>
    %86 = vector.shape_cast %85 : vector<2x8xf32> to vector<2x8x1xf32>
    %87 = vector.broadcast %86 : vector<2x8x1xf32> to vector<2x8x128xf32>
    %88 = arith.subf %84, %87 : vector<2x8x128xf32>
    %89 = math.exp %88 : vector<2x8x128xf32>
    %cst_44 = arith.constant dense<0.000000e+00> : vector<2x8xf32>
    %90 = vector.multi_reduction <add>, %89, %cst_44 [2] : vector<2x8x128xf32> to vector<2x8xf32>
    %91 = vector.shape_cast %90 : vector<2x8xf32> to vector<2x8x1xf32>
    %92 = tpu.reciprocal %91 {approx = true} : vector<2x8x1xf32> -> vector<2x8x1xf32>
    %93 = vector.broadcast %92 : vector<2x8x1xf32> to vector<2x8x128xf32>
    %94 = arith.mulf %89, %93 : vector<2x8x128xf32>
    %95 = arith.truncf %94 : vector<2x8x128xf32> to vector<2x8x128xbf16>
    %c0_45 = arith.constant 0 : index
    %c0_46 = arith.constant 0 : index
    %c0_47 = arith.constant 0 : index
    %96 = vector.load %arg6[%c0_45, %c0_46, %c0_47] : memref<2x128x128xbf16, #tpu.memory_space<vmem>>, vector<2x128x128xbf16>
    "tpu.trace_start"() <{level = 10 : i32, message = "bts,bsc->btc"}> : () -> ()
    %cst_48 = arith.constant dense<0.000000e+00> : vector<2x8x128xf32>
    %97 = tpu.matmul %95, %96, %cst_48 {dimension_numbers = #tpu.dot_dimension_numbers<[2], [1], [1], [2], [0, 0, 0, 1, 1, 2], [0], [0]>} : vector<2x8x128xbf16>, vector<2x128x128xbf16>, vector<2x8x128xf32> -> vector<2x8x128xf32>
    "tpu.trace_stop"() : () -> ()
    %98 = vector.shape_cast %97 : vector<2x8x128xf32> to vector<16x128xf32>
    %99 = arith.addf %98, %60 : vector<16x128xf32>
    %cst_49 = arith.constant 0.707106769 : f32
    %100 = vector.broadcast %cst_49 : f32 to vector<16x128xf32>
    %101 = arith.mulf %99, %100 : vector<16x128xf32>
    %102 = arith.addf %3, %101 : vector<16x128xf32>
    %cst_50 = arith.constant 0.707106769 : f32
    %103 = vector.broadcast %cst_50 : f32 to vector<16x128xf32>
    %104 = arith.mulf %102, %103 : vector<16x128xf32>
    %c0_51 = arith.constant 0 : index
    %c0_52 = arith.constant 0 : index
    %105 = vector.load %arg13[%c0_51, %c0_52] : memref<16x128xf32, #tpu.memory_space<vmem>>, vector<16x128xf32>
    tpu.vector_store %arg13[%c0_51, %c0_52], %104 {strides = array<i32>} : memref<16x128xf32, #tpu.memory_space<vmem>>, vector<16x128xf32>,
    %c1_i32_53 = arith.constant 1 : i32
    %106 = arith.cmpi eq, %arg1, %c1_i32_53 : i32
    %107 = arith.extui %106 : i1 to i32
    %c0_i32_54 = arith.constant 0 : i32
    %108 = arith.cmpi ne, %107, %c0_i32_54 : i32
    scf.if %108 {
      %109 = vector.shape_cast %104 : vector<16x128xf32> to vector<2x8x128xf32>
      %c0_55 = arith.constant 0 : index
      %c0_56 = arith.constant 0 : index
      %c0_57 = arith.constant 0 : index
      %110 = vector.load %arg11[%c0_55, %c0_56, %c0_57] : memref<2x8x128xf32, #tpu.memory_space<vmem>>, vector<2x8x128xf32>
      tpu.vector_store %arg11[%c0_55, %c0_56, %c0_57], %109 {strides = array<i32>} : memref<2x8x128xf32, #tpu.memory_space<vmem>>, vector<2x8x128xf32>,
      %111 = arith.truncf %94 : vector<2x8x128xf32> to vector<2x8x128xbf16>
      %c0_58 = arith.constant 0 : index
      %c0_59 = arith.constant 0 : index
      %c0_60 = arith.constant 0 : index
      %112 = vector.load %arg12[%c0_58, %c0_59, %c0_60] : memref<2x8x128xbf16, #tpu.memory_space<vmem>>, vector<2x8x128xbf16>
      tpu.vector_store %arg12[%c0_58, %c0_59, %c0_60], %111 {strides = array<i32>} : memref<2x8x128xbf16, #tpu.memory_space<vmem>>, vector<2x8x128xbf16>,
    } else {
    }
    return
  }
  func.func @transform_0(%arg0: i32, %arg1: i32) -> (i32, i32, i32) {
    %c0_i32 = arith.constant 0 : i32
    %c0_i32_0 = arith.constant 0 : i32
    %c0_i32_1 = arith.constant 0 : i32
    return %arg0, %c0_i32, %c0_i32_0 : i32, i32, i32
  }
  func.func @transform_1(%arg0: i32, %arg1: i32) -> (i32, i32) {
    %c0_i32 = arith.constant 0 : i32
    %c0_i32_0 = arith.constant 0 : i32
    %c0_i32_1 = arith.constant 0 : i32
    return %c0_i32, %c0_i32_0 : i32, i32
  }
  func.func @transform_2(%arg0: i32, %arg1: i32) -> (i32, i32) {
    %c0_i32 = arith.constant 0 : i32
    %c0_i32_0 = arith.constant 0 : i32
    %c0_i32_1 = arith.constant 0 : i32
    return %c0_i32, %c0_i32_0 : i32, i32
  }
  func.func @transform_3(%arg0: i32, %arg1: i32) -> (i32, i32, i32) {
    %c0_i32 = arith.constant 0 : i32
    %c0_i32_0 = arith.constant 0 : i32
    %c0_i32_1 = arith.constant 0 : i32
    return %arg0, %c0_i32, %c0_i32_0 : i32, i32, i32
  }
  func.func @transform_4(%arg0: i32, %arg1: i32) -> (i32, i32, i32) {
    %c0_i32 = arith.constant 0 : i32
    %c0_i32_0 = arith.constant 0 : i32
    %c0_i32_1 = arith.constant 0 : i32
    return %arg0, %c0_i32, %c0_i32_0 : i32, i32, i32
  }
  func.func @transform_5(%arg0: i32, %arg1: i32) -> (i32, i32, i32, i32) {
    %c0_i32 = arith.constant 0 : i32
    %c0_i32_0 = arith.constant 0 : i32
    %c0_i32_1 = arith.constant 0 : i32
    %c0_i32_2 = arith.constant 0 : i32
    return %arg1, %c0_i32, %c0_i32_0, %c0_i32_1 : i32, i32, i32, i32
  }
  func.func @transform_6(%arg0: i32, %arg1: i32) -> (i32, i32, i32) {
    %c0_i32 = arith.constant 0 : i32
    %c0_i32_0 = arith.constant 0 : i32
    %c0_i32_1 = arith.constant 0 : i32
    return %arg1, %c0_i32, %c0_i32_0 : i32, i32, i32
  }
  func.func @transform_7(%arg0: i32, %arg1: i32) -> (i32, i32, i32) {
    %c0_i32 = arith.constant 0 : i32
    %c0_i32_0 = arith.constant 0 : i32
    %c0_i32_1 = arith.constant 0 : i32
    return %arg1, %c0_i32, %c0_i32_0 : i32, i32, i32
  }
  func.func @transform_8(%arg0: i32, %arg1: i32) -> (i32, i32, i32) {
    %c0_i32 = arith.constant 0 : i32
    %c0_i32_0 = arith.constant 0 : i32
    %c0_i32_1 = arith.constant 0 : i32
    return %arg1, %c0_i32, %c0_i32_0 : i32, i32, i32
  }
  func.func @transform_9(%arg0: i32, %arg1: i32) -> (i32, i32, i32) {
    %c0_i32 = arith.constant 0 : i32
    %c0_i32_0 = arith.constant 0 : i32
    %c0_i32_1 = arith.constant 0 : i32
    return %arg0, %c0_i32, %c0_i32_0 : i32, i32, i32
  }
  func.func @transform_10(%arg0: i32, %arg1: i32) -> (i32, i32, i32) {
    %c0_i32 = arith.constant 0 : i32
    %c0_i32_0 = arith.constant 0 : i32
    %c0_i32_1 = arith.constant 0 : i32
    return %arg0, %c0_i32, %c0_i32_0 : i32, i32, i32
  }
}

module attributes {stable_mosaic.version = 11 : i64} {
  func.func @_fused_decoder_kernel(%arg0: i32, %arg1: i32, %arg2: memref<2x8x128xbf16, #tpu.memory_space<vmem>>, %arg3: memref<128x128xbf16, #tpu.memory_space<vmem>>, %arg4: memref<1x128xf32, #tpu.memory_space<vmem>>, %arg5: memref<2x128x128xbf16, #tpu.memory_space<vmem>>, %arg6: memref<2x128x128xbf16, #tpu.memory_space<vmem>>, %arg7: memref<1x3x128x256xbf16, #tpu.memory_space<vmem>>, %arg8: memref<1x1x256xf32, #tpu.memory_space<vmem>>, %arg9: memref<1x128x128xbf16, #tpu.memory_space<vmem>>, %arg10: memref<1x1x128xf32, #tpu.memory_space<vmem>>, %arg11: memref<2x8x128xf32, #tpu.memory_space<vmem>>, %arg12: memref<2x8x128xbf16, #tpu.memory_space<vmem>>, %arg13: memref<16x128xf32, #tpu.memory_space<vmem>>, %arg14: memref<16x128xf32, #tpu.memory_space<vmem>>) attributes {dimension_semantics = [#tpu.dimension_semantics<parallel>, #tpu.dimension_semantics<arbitrary>], iteration_bounds = array<i64: 1, 2>, scalar_prefetch = 0 : i64, scratch_operands = 2 : i64, tpu.core_type = #tpu.core_type<tc>, window_params = [{transform_indices = @transform_0, window_bounds = array<i64: 2, 8, 128>}, {pipeline_mode = #tpu.pipeline_mode<synchronous>, transform_indices = @transform_1, window_bounds = array<i64: 128, 128>}, {pipeline_mode = #tpu.pipeline_mode<synchronous>, transform_indices = @transform_2, window_bounds = array<i64: 1, 128>}, {transform_indices = @transform_3, window_bounds = array<i64: 2, 128, 128>}, {transform_indices = @transform_4, window_bounds = array<i64: 2, 128, 128>}, {transform_indices = @transform_5, window_bounds = array<i64: 1, 3, 128, 256>}, {transform_indices = @transform_6, window_bounds = array<i64: 1, 1, 256>}, {transform_indices = @transform_7, window_bounds = array<i64: 1, 128, 128>}, {transform_indices = @transform_8, window_bounds = array<i64: 1, 1, 128>}, {transform_indices = @transform_9, window_bounds = array<i64: 2, 8, 128>}, {transform_indices = @transform_10, window_bounds = array<i64: 2, 8, 128>}]} {
    %c0_i32 = arith.constant 0 : i32
    %0 = arith.cmpi eq, %arg1, %c0_i32 : i32
    %1 = arith.extui %0 : i1 to i32
    %c0_i32_0 = arith.constant 0 : i32
    %2 = arith.cmpi ne, %1, %c0_i32_0 : i32
    scf.if %2 {
      %c0_55 = arith.constant 0 : index
      %c0_56 = arith.constant 0 : index
      %c0_57 = arith.constant 0 : index
      %109 = vector.load %arg2[%c0_55, %c0_56, %c0_57] : memref<2x8x128xbf16, #tpu.memory_space<vmem>>, vector<2x8x128xbf16>
      %110 = vector.shape_cast %109 : vector<2x8x128xbf16> to vector<16x128xbf16>
      %c0_58 = arith.constant 0 : index
      %c0_59 = arith.constant 0 : index
      %111 = vector.load %arg3[%c0_58, %c0_59] : memref<128x128xbf16, #tpu.memory_space<vmem>>, vector<128x128xbf16>
      %cst_60 = arith.constant dense<0.000000e+00> : vector<16x128xf32>
      %112 = tpu.matmul %110, %111, %cst_60 {dimension_numbers = #tpu.dot_dimension_numbers<[1], [0], [0], [1], [0, 0, 1, 1], [], []>} : vector<16x128xbf16>, vector<128x128xbf16>, vector<16x128xf32> -> vector<16x128xf32>
      %c0_61 = arith.constant 0 : index
      %c0_62 = arith.constant 0 : index
      %113 = vector.load %arg4[%c0_61, %c0_62] : memref<1x128xf32, #tpu.memory_space<vmem>>, vector<1x128xf32>
      %114 = vector.broadcast %113 : vector<1x128xf32> to vector<16x128xf32>
      %115 = arith.addf %112, %114 : vector<16x128xf32>
      %c0_63 = arith.constant 0 : index
      %c0_64 = arith.constant 0 : index
      %116 = vector.load %arg14[%c0_63, %c0_64] : memref<16x128xf32, #tpu.memory_space<vmem>>, vector<16x128xf32>
      tpu.vector_store %arg14[%c0_63, %c0_64], %115 {strides = array<i32>} : memref<16x128xf32, #tpu.memory_space<vmem>>, vector<16x128xf32>,
      %c0_65 = arith.constant 0 : index
      %c0_66 = arith.constant 0 : index
      %117 = vector.load %arg13[%c0_65, %c0_66] : memref<16x128xf32, #tpu.memory_space<vmem>>, vector<16x128xf32>
      tpu.vector_store %arg13[%c0_65, %c0_66], %115 {strides = array<i32>} : memref<16x128xf32, #tpu.memory_space<vmem>>, vector<16x128xf32>,
    } else {
    }
    %c0 = arith.constant 0 : index
    %c0_1 = arith.constant 0 : index
    %3 = vector.load %arg13[%c0, %c0_1] : memref<16x128xf32, #tpu.memory_space<vmem>>, vector<16x128xf32>
    %4 = tpu.iota {dimensions = array<i32: 0>} : vector<16x1xi32>
    %c8_i32 = arith.constant 8 : i32
    %c0_i32_2 = arith.constant 0 : i32
    %5 = arith.cmpi eq, %c8_i32, %c0_i32_2 : i32
    %c1_i32 = arith.constant 1 : i32
    %6 = arith.select %5, %c1_i32, %c8_i32 : i32
    %7 = vector.broadcast %6 : i32 to vector<16x1xi32>
    %8 = arith.remsi %4, %7 : vector<16x1xi32>
    %c0_i32_3 = arith.constant 0 : i32
    %9 = vector.broadcast %c0_i32_3 : i32 to vector<16x1xi32>
    %10 = arith.cmpi ne, %8, %9 : vector<16x1xi32>
    %c0_i32_4 = arith.constant 0 : i32
    %11 = vector.broadcast %c0_i32_4 : i32 to vector<16x1xi32>
    %12 = arith.cmpi slt, %8, %11 : vector<16x1xi32>
    %c0_i32_5 = arith.constant 0 : i32
    %13 = arith.cmpi slt, %6, %c0_i32_5 : i32
    %14 = vector.broadcast %13 : i1 to vector<16x1xi1>
    %15 = vector.broadcast %14 : vector<16x1xi1> to vector<16x1xi1>
    %16 = arith.xori %12, %15 : vector<16x1xi1>
    %17 = arith.andi %16, %10 : vector<16x1xi1>
    %18 = vector.broadcast %6 : i32 to vector<16x1xi32>
    %19 = arith.addi %8, %18 : vector<16x1xi32>
    %20 = arith.select %17, %19, %8 : vector<16x1xi1>, vector<16x1xi32>
    %21 = arith.truncf %3 : vector<16x128xf32> to vector<16x128xbf16>
    %c0_6 = arith.constant 0 : index
    %c2 = arith.constant 2 : index
    %c0_7 = arith.constant 0 : index
    %c0_8 = arith.constant 0 : index
    %22 = vector.load %arg7[%c0_6, %c2, %c0_7, %c0_8] : memref<1x3x128x256xbf16, #tpu.memory_space<vmem>>, vector<1x1x128x256xbf16>
    %23 = vector.shape_cast %22 : vector<1x1x128x256xbf16> to vector<128x256xbf16>
    %cst = arith.constant dense<0.000000e+00> : vector<16x256xf32>
    %24 = tpu.matmul %21, %23, %cst {dimension_numbers = #tpu.dot_dimension_numbers<[1], [0], [0], [1], [0, 0, 1, 1], [], []>} : vector<16x128xbf16>, vector<128x256xbf16>, vector<16x256xf32> -> vector<16x256xf32>
    %c2_i32 = arith.constant 2 : i32
    %25 = tpu.dynamic_rotate %3 by %c2_i32 dim 0 : vector<16x128xf32>, i32 -> vector<16x128xf32>
    %c2_i32_9 = arith.constant 2 : i32
    %26 = vector.broadcast %c2_i32_9 : i32 to vector<16x1xi32>
    %27 = arith.cmpi sge, %20, %26 : vector<16x1xi32>
    %cst_10 = arith.constant 0.000000e+00 : f32
    %28 = vector.shape_cast %27 : vector<16x1xi1> to vector<16x1xi1>
    %29 = vector.broadcast %28 : vector<16x1xi1> to vector<16x128xi1>
    %30 = vector.broadcast %cst_10 : f32 to vector<16x128xf32>
    %31 = arith.select %29, %25, %30 : vector<16x128xi1>, vector<16x128xf32>
    %32 = arith.truncf %31 : vector<16x128xf32> to vector<16x128xbf16>
    %c0_11 = arith.constant 0 : index
    %c0_12 = arith.constant 0 : index
    %c0_13 = arith.constant 0 : index
    %c0_14 = arith.constant 0 : index
    %33 = vector.load %arg7[%c0_11, %c0_12, %c0_13, %c0_14] : memref<1x3x128x256xbf16, #tpu.memory_space<vmem>>, vector<1x1x128x256xbf16>
    %34 = vector.shape_cast %33 : vector<1x1x128x256xbf16> to vector<128x256xbf16>
    %cst_15 = arith.constant dense<0.000000e+00> : vector<16x256xf32>
    %35 = tpu.matmul %32, %34, %cst_15 {dimension_numbers = #tpu.dot_dimension_numbers<[1], [0], [0], [1], [0, 0, 1, 1], [], []>} : vector<16x128xbf16>, vector<128x256xbf16>, vector<16x256xf32> -> vector<16x256xf32>
    %36 = arith.addf %24, %35 : vector<16x256xf32>
    %c1_i32_16 = arith.constant 1 : i32
    %37 = tpu.dynamic_rotate %3 by %c1_i32_16 dim 0 : vector<16x128xf32>, i32 -> vector<16x128xf32>
    %c1_i32_17 = arith.constant 1 : i32
    %38 = vector.broadcast %c1_i32_17 : i32 to vector<16x1xi32>
    %39 = arith.cmpi sge, %20, %38 : vector<16x1xi32>
    %cst_18 = arith.constant 0.000000e+00 : f32
    %40 = vector.shape_cast %39 : vector<16x1xi1> to vector<16x1xi1>
    %41 = vector.broadcast %40 : vector<16x1xi1> to vector<16x128xi1>
    %42 = vector.broadcast %cst_18 : f32 to vector<16x128xf32>
    %43 = arith.select %41, %37, %42 : vector<16x128xi1>, vector<16x128xf32>
    %44 = arith.truncf %43 : vector<16x128xf32> to vector<16x128xbf16>
    %c0_19 = arith.constant 0 : index
    %c1 = arith.constant 1 : index
    %c0_20 = arith.constant 0 : index
    %c0_21 = arith.constant 0 : index
    %45 = vector.load %arg7[%c0_19, %c1, %c0_20, %c0_21] : memref<1x3x128x256xbf16, #tpu.memory_space<vmem>>, vector<1x1x128x256xbf16>
    %46 = vector.shape_cast %45 : vector<1x1x128x256xbf16> to vector<128x256xbf16>
    %cst_22 = arith.constant dense<0.000000e+00> : vector<16x256xf32>
    %47 = tpu.matmul %44, %46, %cst_22 {dimension_numbers = #tpu.dot_dimension_numbers<[1], [0], [0], [1], [0, 0, 1, 1], [], []>} : vector<16x128xbf16>, vector<128x256xbf16>, vector<16x256xf32> -> vector<16x256xf32>
    %48 = arith.addf %36, %47 : vector<16x256xf32>
    %c0_23 = arith.constant 0 : index
    %c0_24 = arith.constant 0 : index
    %c0_25 = arith.constant 0 : index
    %49 = vector.load %arg8[%c0_23, %c0_24, %c0_25] : memref<1x1x256xf32, #tpu.memory_space<vmem>>, vector<1x1x256xf32>
    %50 = vector.shape_cast %49 : vector<1x1x256xf32> to vector<1x256xf32>
    %51 = vector.broadcast %50 : vector<1x256xf32> to vector<16x256xf32>
    %52 = arith.addf %48, %51 : vector<16x256xf32>
    %53 = vector.extract_strided_slice %52 {offsets = [0, 0], sizes = [16, 128], strides = [1, 1]} : vector<16x256xf32> to vector<16x128xf32>
    %54 = vector.extract_strided_slice %52 {offsets = [0, 128], sizes = [16, 128], strides = [1, 1]} : vector<16x256xf32> to vector<16x128xf32>
    %55 = arith.negf %54 : vector<16x128xf32>
    %56 = math.exp %55 : vector<16x128xf32>
    %cst_26 = arith.constant 1.000000e+00 : f32
    %57 = vector.broadcast %cst_26 : f32 to vector<16x128xf32>
    %58 = arith.addf %57, %56 : vector<16x128xf32>
    %59 = arith.divf %57, %58 : vector<16x128xf32>
    %60 = arith.mulf %53, %59 : vector<16x128xf32>
    %61 = arith.truncf %60 : vector<16x128xf32> to vector<16x128xbf16>
    %c0_27 = arith.constant 0 : index
    %c0_28 = arith.constant 0 : index
    %c0_29 = arith.constant 0 : index
    %62 = vector.load %arg9[%c0_27, %c0_28, %c0_29] : memref<1x128x128xbf16, #tpu.memory_space<vmem>>, vector<1x128x128xbf16>
    %63 = vector.shape_cast %62 : vector<1x128x128xbf16> to vector<128x128xbf16>
    %cst_30 = arith.constant dense<0.000000e+00> : vector<16x128xf32>
    %64 = tpu.matmul %61, %63, %cst_30 {dimension_numbers = #tpu.dot_dimension_numbers<[1], [0], [0], [1], [0, 0, 1, 1], [], []>} : vector<16x128xbf16>, vector<128x128xbf16>, vector<16x128xf32> -> vector<16x128xf32>
    %c0_31 = arith.constant 0 : index
    %c0_32 = arith.constant 0 : index
    %c0_33 = arith.constant 0 : index
    %65 = vector.load %arg10[%c0_31, %c0_32, %c0_33] : memref<1x1x128xf32, #tpu.memory_space<vmem>>, vector<1x1x128xf32>
    %66 = vector.shape_cast %65 : vector<1x1x128xf32> to vector<1x128xf32>
    %67 = vector.broadcast %66 : vector<1x128xf32> to vector<16x128xf32>
    %68 = arith.addf %64, %67 : vector<16x128xf32>
    %c0_34 = arith.constant 0 : index
    %c0_35 = arith.constant 0 : index
    %69 = vector.load %arg14[%c0_34, %c0_35] : memref<16x128xf32, #tpu.memory_space<vmem>>, vector<16x128xf32>
    %70 = arith.addf %69, %68 : vector<16x128xf32>
    %cst_36 = arith.constant 0.707106769 : f32
    %71 = vector.broadcast %cst_36 : f32 to vector<16x128xf32>
    %72 = arith.mulf %70, %71 : vector<16x128xf32>
    %73 = vector.shape_cast %72 : vector<16x128xf32> to vector<2x8x128xf32>
    %74 = arith.truncf %73 : vector<2x8x128xf32> to vector<2x8x128xbf16>
    %c0_37 = arith.constant 0 : index
    %c0_38 = arith.constant 0 : index
    %c0_39 = arith.constant 0 : index
    %75 = vector.load %arg5[%c0_37, %c0_38, %c0_39] : memref<2x128x128xbf16, #tpu.memory_space<vmem>>, vector<2x128x128xbf16>
    "tpu.trace_start"() <{level = 10 : i32, message = "btc,bcs->bts"}> : () -> ()
    %cst_40 = arith.constant dense<0.000000e+00> : vector<2x8x128xf32>
    %76 = tpu.matmul %74, %75, %cst_40 {dimension_numbers = #tpu.dot_dimension_numbers<[2], [1], [1], [2], [0, 0, 0, 1, 1, 2], [0], [0]>} : vector<2x8x128xbf16>, vector<2x128x128xbf16>, vector<2x8x128xf32> -> vector<2x8x128xf32>
    "tpu.trace_stop"() : () -> ()
    %77 = tpu.iota {dimensions = array<i32: 2>} : vector<1x1x128xi32>
    %c16_i32 = arith.constant 16 : i32
    %78 = vector.broadcast %c16_i32 : i32 to vector<1x1x128xi32>
    %79 = arith.cmpi slt, %77, %78 : vector<1x1x128xi32>
    %cst_41 = arith.constant 0.000000e+00 : f32
    %cst_42 = arith.constant -1.000000e+30 : f32
    %80 = vector.broadcast %cst_41 : f32 to vector<1x1x128xf32>
    %81 = vector.broadcast %cst_42 : f32 to vector<1x1x128xf32>
    %82 = arith.select %79, %80, %81 : vector<1x1x128xi1>, vector<1x1x128xf32>
    %83 = vector.broadcast %82 : vector<1x1x128xf32> to vector<2x8x128xf32>
    %84 = arith.addf %76, %83 : vector<2x8x128xf32>
    %cst_43 = arith.constant dense<0xFF800000> : vector<2x8xf32>
    %85 = vector.multi_reduction <maximumf>, %84, %cst_43 [2] : vector<2x8x128xf32> to vector<2x8xf32>
    %86 = vector.shape_cast %85 : vector<2x8xf32> to vector<2x8x1xf32>
    %87 = vector.broadcast %86 : vector<2x8x1xf32> to vector<2x8x128xf32>
    %88 = arith.subf %84, %87 : vector<2x8x128xf32>
    %89 = math.exp %88 : vector<2x8x128xf32>
    %cst_44 = arith.constant dense<0.000000e+00> : vector<2x8xf32>
    %90 = vector.multi_reduction <add>, %89, %cst_44 [2] : vector<2x8x128xf32> to vector<2x8xf32>
    %91 = vector.shape_cast %90 : vector<2x8xf32> to vector<2x8x1xf32>
    %92 = tpu.reciprocal %91 {approx = true} : vector<2x8x1xf32> -> vector<2x8x1xf32>
    %93 = vector.broadcast %92 : vector<2x8x1xf32> to vector<2x8x128xf32>
    %94 = arith.mulf %89, %93 : vector<2x8x128xf32>
    %95 = arith.truncf %94 : vector<2x8x128xf32> to vector<2x8x128xbf16>
    %c0_45 = arith.constant 0 : index
    %c0_46 = arith.constant 0 : index
    %c0_47 = arith.constant 0 : index
    %96 = vector.load %arg6[%c0_45, %c0_46, %c0_47] : memref<2x128x128xbf16, #tpu.memory_space<vmem>>, vector<2x128x128xbf16>
    "tpu.trace_start"() <{level = 10 : i32, message = "bts,bsc->btc"}> : () -> ()
    %cst_48 = arith.constant dense<0.000000e+00> : vector<2x8x128xf32>
    %97 = tpu.matmul %95, %96, %cst_48 {dimension_numbers = #tpu.dot_dimension_numbers<[2], [1], [1], [2], [0, 0, 0, 1, 1, 2], [0], [0]>} : vector<2x8x128xbf16>, vector<2x128x128xbf16>, vector<2x8x128xf32> -> vector<2x8x128xf32>
    "tpu.trace_stop"() : () -> ()
    %98 = vector.shape_cast %97 : vector<2x8x128xf32> to vector<16x128xf32>
    %99 = arith.addf %98, %60 : vector<16x128xf32>
    %cst_49 = arith.constant 0.707106769 : f32
    %100 = vector.broadcast %cst_49 : f32 to vector<16x128xf32>
    %101 = arith.mulf %99, %100 : vector<16x128xf32>
    %102 = arith.addf %3, %101 : vector<16x128xf32>
    %cst_50 = arith.constant 0.707106769 : f32
    %103 = vector.broadcast %cst_50 : f32 to vector<16x128xf32>
    %104 = arith.mulf %102, %103 : vector<16x128xf32>
    %c0_51 = arith.constant 0 : index
    %c0_52 = arith.constant 0 : index
    %105 = vector.load %arg13[%c0_51, %c0_52] : memref<16x128xf32, #tpu.memory_space<vmem>>, vector<16x128xf32>
    tpu.vector_store %arg13[%c0_51, %c0_52], %104 {strides = array<i32>} : memref<16x128xf32, #tpu.memory_space<vmem>>, vector<16x128xf32>,
    %c1_i32_53 = arith.constant 1 : i32
    %106 = arith.cmpi eq, %arg1, %c1_i32_53 : i32
    %107 = arith.extui %106 : i1 to i32
    %c0_i32_54 = arith.constant 0 : i32
    %108 = arith.cmpi ne, %107, %c0_i32_54 : i32
    scf.if %108 {
      %109 = vector.shape_cast %104 : vector<16x128xf32> to vector<2x8x128xf32>
      %c0_55 = arith.constant 0 : index
      %c0_56 = arith.constant 0 : index
      %c0_57 = arith.constant 0 : index
      %110 = vector.load %arg11[%c0_55, %c0_56, %c0_57] : memref<2x8x128xf32, #tpu.memory_space<vmem>>, vector<2x8x128xf32>
      tpu.vector_store %arg11[%c0_55, %c0_56, %c0_57], %109 {strides = array<i32>} : memref<2x8x128xf32, #tpu.memory_space<vmem>>, vector<2x8x128xf32>,
      %111 = arith.truncf %94 : vector<2x8x128xf32> to vector<2x8x128xbf16>
      %c0_58 = arith.constant 0 : index
      %c0_59 = arith.constant 0 : index
      %c0_60 = arith.constant 0 : index
      %112 = vector.load %arg12[%c0_58, %c0_59, %c0_60] : memref<2x8x128xbf16, #tpu.memory_space<vmem>>, vector<2x8x128xbf16>
      tpu.vector_store %arg12[%c0_58, %c0_59, %c0_60], %111 {strides = array<i32>} : memref<2x8x128xbf16, #tpu.memory_space<vmem>>, vector<2x8x128xbf16>,
    } else {
    }
    return
  }
  func.func @transform_0(%arg0: i32, %arg1: i32) -> (i32, i32, i32) {
    %c0_i32 = arith.constant 0 : i32
    %c0_i32_0 = arith.constant 0 : i32
    %c0_i32_1 = arith.constant 0 : i32
    return %arg0, %c0_i32, %c0_i32_0 : i32, i32, i32
  }
  func.func @transform_1(%arg0: i32, %arg1: i32) -> (i32, i32) {
    %c0_i32 = arith.constant 0 : i32
    %c0_i32_0 = arith.constant 0 : i32
    %c0_i32_1 = arith.constant 0 : i32
    return %c0_i32, %c0_i32_0 : i32, i32
  }
  func.func @transform_2(%arg0: i32, %arg1: i32) -> (i32, i32) {
    %c0_i32 = arith.constant 0 : i32
    %c0_i32_0 = arith.constant 0 : i32
    %c0_i32_1 = arith.constant 0 : i32
    return %c0_i32, %c0_i32_0 : i32, i32
  }
  func.func @transform_3(%arg0: i32, %arg1: i32) -> (i32, i32, i32) {
    %c0_i32 = arith.constant 0 : i32
    %c0_i32_0 = arith.constant 0 : i32
    %c0_i32_1 = arith.constant 0 : i32
    return %arg0, %c0_i32, %c0_i32_0 : i32, i32, i32
  }
  func.func @transform_4(%arg0: i32, %arg1: i32) -> (i32, i32, i32) {
    %c0_i32 = arith.constant 0 : i32
    %c0_i32_0 = arith.constant 0 : i32
    %c0_i32_1 = arith.constant 0 : i32
    return %arg0, %c0_i32, %c0_i32_0 : i32, i32, i32
  }
  func.func @transform_5(%arg0: i32, %arg1: i32) -> (i32, i32, i32, i32) {
    %c0_i32 = arith.constant 0 : i32
    %c0_i32_0 = arith.constant 0 : i32
    %c0_i32_1 = arith.constant 0 : i32
    %c0_i32_2 = arith.constant 0 : i32
    return %arg1, %c0_i32, %c0_i32_0, %c0_i32_1 : i32, i32, i32, i32
  }
  func.func @transform_6(%arg0: i32, %arg1: i32) -> (i32, i32, i32) {
    %c0_i32 = arith.constant 0 : i32
    %c0_i32_0 = arith.constant 0 : i32
    %c0_i32_1 = arith.constant 0 : i32
    return %arg1, %c0_i32, %c0_i32_0 : i32, i32, i32
  }
  func.func @transform_7(%arg0: i32, %arg1: i32) -> (i32, i32, i32) {
    %c0_i32 = arith.constant 0 : i32
    %c0_i32_0 = arith.constant 0 : i32
    %c0_i32_1 = arith.constant 0 : i32
    return %arg1, %c0_i32, %c0_i32_0 : i32, i32, i32
  }
  func.func @transform_8(%arg0: i32, %arg1: i32) -> (i32, i32, i32) {
    %c0_i32 = arith.constant 0 : i32
    %c0_i32_0 = arith.constant 0 : i32
    %c0_i32_1 = arith.constant 0 : i32
    return %arg1, %c0_i32, %c0_i32_0 : i32, i32, i32
  }
  func.func @transform_9(%arg0: i32, %arg1: i32) -> (i32, i32, i32) {
    %c0_i32 = arith.constant 0 : i32
    %c0_i32_0 = arith.constant 0 : i32
    %c0_i32_1 = arith.constant 0 : i32
    return %arg0, %c0_i32, %c0_i32_0 : i32, i32, i32
  }
  func.func @transform_10(%arg0: i32, %arg1: i32) -> (i32, i32, i32) {
    %c0_i32 = arith.constant 0 : i32
    %c0_i32_0 = arith.constant 0 : i32
    %c0_i32_1 = arith.constant 0 : i32
    return %arg0, %c0_i32, %c0_i32_0 : i32, i32, i32
  }
}

</mosaic_0001>

<bundles_post_ra>
// kernel: tpu_custom_call.1
= control target key start
LH: loop header
LB: loop body
LE: loop exit
PB: predicated region body
PF: predicated region fallthrough
CT: control target
= control target key end

     0   :  { %s3311_s0 = inlined_call_operand.hbm [shape: bf16[2,8,128], index: 0, kind: input, shape index: {}]   ;;  %s3312_s1 = inlined_call_operand.hbm [shape: bf16[128,128], index: 1, kind: input, shape index: {}]   ;;  %s3313_s2 = inlined_call_operand.hbm [shape: f32[1,128], index: 2, kind: input, shape index: {}]   ;;  %s3314_s3 = inlined_call_operand.hbm [shape: bf16[2,128,128], index: 3, kind: input, shape index: {}]   ;;  %s3315_s4 = inlined_call_operand.hbm [shape: bf16[2,128,128], index: 4, kind: input, shape index: {}]   ;;  %s3316_s5 = inlined_call_operand.hbm [shape: bf16[2,3,128,256], index: 5, kind: input, shape index: {}]   ;;  %s3317_s6 = inlined_call_operand.vmem [shape: f32[2,1,256], index: 6, kind: input, shape index: {}]   ;;  %s3318_s7 = inlined_call_operand.hbm [shape: bf16[2,128,128], index: 7, kind: input, shape index: {}]   ;;  %s3319_s8 = inlined_call_operand.vmem [shape: f32[2,1,128], index: 8, kind: input, shape index: {}]   ;;  %s3320_s9 = inlined_call_operand.hbm [shape: f32[2,8,128], index: 9, kind: output, shape index: {0}]   ;;  %s3321_s10 = inlined_call_operand.hbm [shape: bf16[2,8,128], index: 10, kind: output, shape index: {1}]  }
   0x1   :  { %3329 = sst [smem:[#allocation29_spill]] %s3312_s1 }
   0x2   :  { %3330 = sst [smem:[#allocation30_spill]] %s3314_s3 }
   0x3   :  { %3331 = sst [smem:[#allocation31_spill]] %s3316_s5 }
   0x4   :  { %3332 = sst [smem:[#allocation32_spill]] %s3320_s9 }
   0x5   :  { %3333 = sst [smem:[#allocation33_spill]] %s3321_s10 }
   0x6   :  { %16 = vsyncpa [#allocation5], 0 }
   0x7   :  { %17 = vsyncpa [#allocation8], 0 }
   0x8   :  { %18 = vsyncpa [#allocation11], 0 }
   0x9   :  { %19 = vsyncpa [#allocation14], 0 }
   0xa   :  { %21 = vsyncpa [#allocation14 + $0x1], 0 }
   0xb   :  { %22 = vsyncpa [#allocation6], 0 }
   0xc   :  { %23 = vsyncpa [#allocation18], 0  ;;  %s2928_s13 = smov 0   ;;  %s2930_s14 = smov 0  }
   0xd   :  { %s2932_s15 = smov 0   ;;  %s2934_s16 = smov 0  }
   0xe   :  { %s2936_s17 = smov 0   ;;  %s2938_s18 = smov 0  }
   0xf LB: > { %3334 = sst [smem:[#allocation25_spill]] %s2843_s15  ;;  %s2959_s19 = sadd.s32 4294967295, %s2855_s18   ;;  %s2855_s18 = sphi %s2938_s18, %s29_s18   ;;  %s2851_s17 = sphi %s2936_s17, %s3360_s17   ;;  %s2847_s16 = sphi %s2934_s16, %s3359_s16   ;;  %s2843_s15 = sphi %s2932_s15, %s3355_s15   ;;  %s2839_s14 = sphi %s2930_s14, %s3358_s14   ;;  %s2835_s13 = sphi %s2928_s13, %s3357_s13  }
  0x10   : > { %3335 = sst [smem:[#allocation26_spill]] %s2855_s18  ;;  %p1800_p0 = scmp.ge.s32.totalorder %s2855_s18, 1 }
  0x11   : > { %p182_p1 = scmp.eq.s32.totalorder %s2959_s19, 0  ;;  %p322_p2 = scmp.lt.s32.totalorder %s2855_s18, 3 }
  0x12   : > { %s3336_s1 = sld [smem:[#allocation29_spill]]  ;;  %s2857_s24 = smov [#allocation7]  }
  0x13   : > { %p2967_p3 = pnand %p1800_p0, %p322_p2  ;;  %s352_s25 = sshll.u32 %s2857_s24, 4  ;;  %s353_s25 = int_to_ptr.vmem [resolvable:$true] %s352_s25 }
  0x14   : > { %s3338_s3 = sld [smem:[#allocation30_spill]]  ;;  %s2858_s30 = smov [#allocation10]  }
  0x15   : > { %p2399_p4 = pneg %p2967_p3  ;;  %s382_s11 = sshll.u32 %s2858_s30, 4  ;;  %s383_s11 = int_to_ptr.vmem [resolvable:$true] %s382_s11 }
  0x16   : > { %s3322_s12 = smov 64   ;;  %s3324_s20 = smov 4  }
  0x17   : > { %p2978_p5 = pnand %p2399_p4, %p182_p1  ;;  %s38_s21 = sadd.s32 1, %s2851_s17 }
  0x18   : > { %s350_s22 = sshll.u32 %s3336_s1, 4  ;;  %s168_s24 = sadd.s32 1, %s2843_s15  ;;  %s351_s22 = int_to_ptr.hbm [resolvable:$true] %s350_s22 }
  0x19   : > { %2405 = dma.hbm_to_vmem [thread:$0]  (!%p2978_p5), %s351_s22, 1024, %s353_s25, [#allocation8], %s3322_s12, %s3322_s12, %s3324_s20  }
  0x1a   : > { %s380_s28 = sshll.u32 %s3338_s3, 4  ;;  %p39_p6 = scmp.ge.s32.totalorder %s38_s21, 2  ;;  %s381_s28 = int_to_ptr.hbm [resolvable:$true] %s380_s28 }
  0x1b   : > { %2411 = dma.hbm_to_vmem [thread:$0]  (!%p2978_p5), %s381_s28, 2048, %s383_s11, [#allocation11], %s3322_s12, %s3322_s12, %s3324_s20  }
  0x1c   : > { %p175_p7 = scmp.ne.s32.totalorder %s2843_s15, %s2839_s14  ;;  %p176_p8 = scmp.eq.s32.totalorder %s2855_s18, 0 }
  0x1d   : > { %p181_p9 = scmp.ne.s32.totalorder %s2839_s14, %s2835_s13  ;;  %s3362_s21 = smov (%p39_p6, %s38_s21), 0 }
  0x1e   : > { %3340 = sst [smem:[#allocation27_spill]] %s3362_s21  ;;  %p177_p10 = por %p176_p8, %p175_p7 }
  0x1f   : > { %p3003_p11 = por %p182_p1, %p181_p9  ;;  %s165_s25 = ssub.s32 %s2851_s17, %s3362_s21 }
  0x20   : > { %p2427_p12 = scmp.lt.s32.totalorder %s2855_s18, 2  ;;  %p166_p13 = scmp.eq.s32.totalorder %s165_s25, 0 }
  0x21   : > { %s414_s26 = sand.u32 1, %s2855_s18   ;;  %s416_s27 = sand.u32 1, %s2843_s15  }
  0x22   : > { %s3013_s28 = scalar_select %p166_p13, %s2843_s15, %s168_s24  }
  0x23   : > { %s2364_s30 = smul.u32 384, %s416_s27  ;;  %p3015_p0 = pnand %p2427_p12, %p177_p10 }
  0x24   : > { %3342 = sst [smem:[#allocation28_spill]] %s3013_s28  ;;  %s2365_s13 = smul.u32 384, %s2851_s17 }
  0x25   : > { %s3344_s5 = sld [smem:[#allocation31_spill]]  ;;  %s418_s3 = scalar_lea.vmem [#allocation13], %s2364_s30 }
  0x26   : > { %s426_s21 = sshll.u32 %s418_s3, 4  ;;  %s3023_s25 = scalar_lea.sflag [#allocation14], %s414_s26  ;;  %s427_s21 = int_to_ptr.vmem [resolvable:$true] %s426_s21 }
  0x27   : > { %s2861_s24 = smov 128   ;;  %s2862_s28 = smov 8  }
  0x28   : > { %s1808_s15 = sshll.u32 %s416_s27, 6  ;;  %s336_s12 = sshll.u32 %s3311_s0, 4  ;;  %s337_s12 = int_to_ptr.hbm [resolvable:$true] %s336_s12 }
  0x29   : > { %s2863_s20 = smov [#allocation4]   ;;  %s365_s26 = sshll.u32 %s3313_s2, 4  ;;  %s366_s26 = int_to_ptr.hbm [resolvable:$true] %s365_s26 }
  0x2a   : > { %s338_s3 = sshll.u32 %s2863_s20, 4  ;;  %s398_s18 = sshll.u32 %s3315_s4, 4  ;;  %s339_s3 = int_to_ptr.vmem [resolvable:$true] %s338_s3  ;;  %s399_s18 = int_to_ptr.hbm [resolvable:$true] %s398_s18 }
  0x2b   : > { %s423_s1 = scalar_lea.hbm %s3344_s5, %s2365_s13  ;;  %s3345_s13 = smov 4  }
  0x2c   : > { %s424_s10 = sshll.u32 %s423_s1, 4  ;;  %s3346_s5 = smov 64   ;;  %s425_s10 = int_to_ptr.hbm [resolvable:$true] %s424_s10 }
  0x2d   : > { %2418 = dma.hbm_to_vmem [thread:$0]  (!%p3015_p0), %s425_s10, 6144, %s427_s21, %s3023_s25, %s2861_s24, %s2861_s24, %s2862_s28  }
  0x2e   : > { %2402 = dma.hbm_to_vmem [thread:$0]  (!%p2978_p5), %s337_s12, 128, %s339_s3, [#allocation5], %s3346_s5, %s3346_s5, %s3345_s13  }
  0x2f   : > { %s2864_s10 = smov [#allocation9]   ;;  %s2261_s28 = sshll.u32 %s2851_s17, 6 }
  0x30   : > { %s367_s21 = sshll.u32 %s2864_s10, 4  ;;  %s2865_s24 = smov [#allocation12]   ;;  %s368_s21 = int_to_ptr.vmem [resolvable:$true] %s367_s21 }
  0x31   : > { %2408 = dma.hbm_to_vmem [thread:$0]  (!%p2978_p5), %s366_s26, 16, %s368_s21, [#allocation8]  }
  0x32   : > { %s400_s20 = sshll.u32 %s2865_s24, 4  ;;  %s452_s12 = scalar_lea.hbm %s3318_s7, %s2261_s28  ;;  %s401_s20 = int_to_ptr.vmem [resolvable:$true] %s400_s20 }
  0x33   : > { %s453_s3 = sshll.u32 %s452_s12, 4  ;;  %s447_s10 = scalar_lea.vmem [#allocation15], %s1808_s15  ;;  %s454_s3 = int_to_ptr.hbm [resolvable:$true] %s453_s3 }
  0x34   : > { %2414 = dma.hbm_to_vmem [thread:$0]  (!%p2978_p5), %s399_s18, 2048, %s401_s20, [#allocation11], %s3346_s5, %s3346_s5, %s3345_s13  }
  0x35   : > { %s455_s27 = sshll.u32 %s447_s10, 4  ;;  %473 = sbr.rel (%p2967_p3) target bundleno = 1173 (0x495), region = 56  ;;  %s456_s27 = int_to_ptr.vmem [resolvable:$true] %s455_s27 }
  0x36   : > { %2421 = dma.hbm_to_vmem [thread:$0]  (!%p3015_p0), %s454_s3, 1024, %s456_s27, %s3023_s25, %s3346_s5, %s3346_s5, %s3345_s13  }
  0x3a   : > { %2810 = dma.done.wait (%p182_p1), [#allocation5], 128  }
  0x3b   : > { %2812 = vsyncadd (%p182_p1), [#allocation5], 4294967168 }
  0x3c   : > { %2814 = dma.done.wait (%p182_p1), [#allocation8], 1040  }
  0x3d   : > { %2816 = vsyncadd (%p182_p1), [#allocation8], 4294966256 }
  0x3e   : > { %2818 = dma.done.wait (%p182_p1), [#allocation11], 4096  }
  0x3f   : > { %2820 = vsyncadd (%p182_p1), [#allocation11], 4294963200  ;;  %s500_s5 = sand.u32 1, %s2959_s19   ;;  %s502_s15 = sand.u32 1, %s2839_s14  }
  0x40   : > { %s2366_s23 = smul.u32 384, %s502_s15  ;;  %s501_s29 = scalar_lea.sflag [#allocation14], %s500_s5 }
  0x42   : > { %s3075_s11 = scalar_lea.vmem [#allocation13], %s2366_s23 }
  0x43   : > { %2822 = dma.done.wait (%p3003_p11), %s501_s29, 7168  }
  0x44   : > { %2824 = vsyncadd (%p3003_p11), %s501_s29, 4294960128  ;;  %s1817_s25 = sshll.u32 %s502_s15, 6  ;;  %p562_p2 = scmp.lt.s32.totalorder %s2847_s16, 1 }
  0x45   : > { %s3095_s22 = scalar_lea.vmem [#allocation15], %s1817_s25  ;;  %p1819_p1 = scmp.ne.s32.totalorder %s2847_s16, 0 }
  0x46   : > { %s3083_s26 = scalar_select %p562_p2, %s2847_s16, 1 }
  0x47   : > { %574 = sbr.rel (%p1819_p1) target bundleno = 246 (0xf6), region = 88 }
  0x48   : > { %s1818_s13 = sshll.u32 %s3083_s26, 1  ;;  %s568_s18 = scalar_lea.vmem %s3319_s8, %s3083_s26 }
  0x49   : > { %s3093_s20 = scalar_lea.vmem %s3317_s6, %s1818_s13 }
  0x4c   : > { %v2270_v0 = vld [vmem:[#allocation7 + $0x38] sm:$0xff]  ;;  %v2269_v1 = vld [vmem:[#allocation7 + $0x30] sm:$0xff]  ;;  %v2268_v2 = vld [vmem:[#allocation7 + $0x28] sm:$0xff] }
  0x4d   : > { %651 = vmatpush.bf16.msra.mxu0 %v2270_v0  ;;  %v2267_v3 = vld [vmem:[#allocation7 + $0x20] sm:$0xff]  ;;  %v2266_v4 = vld [vmem:[#allocation7 + $0x18] sm:$0xff]  ;;  %v2265_v5 = vld [vmem:[#allocation7 + $0x10] sm:$0xff] }
  0x4e   : > { %v2264_v6 = vld [vmem:[#allocation7 + $0x8] sm:$0xff]  ;;  %v2263_v7 = vld [vmem:[#allocation7] sm:$0xff]  ;;  %v2262_v8 = vld [vmem:[#allocation4] sm:$0xff] }
  0x4f   : > { %v2501_v9 = vld [vmem:[#allocation9] ss:$0 sm:$0xff] }
  0x51   : > { %652 = vmatpush.bf16.msra.mxu0 %v2269_v1 }
  0x55   : > { %653 = vmatpush.bf16.msra.mxu0 %v2268_v2 }
  0x59   : > { %654 = vmatpush.bf16.msra.mxu0 %v2267_v3 }
  0x5d   : > { %655 = vmatpush.bf16.msra.mxu0 %v2266_v4 }
  0x61   : > { %656 = vmatpush.bf16.msra.mxu0 %v2265_v5 }
  0x65   : > { %657 = vmatpush.bf16.msra.mxu0 %v2264_v6 }
  0x69   : > { %658 = vmatpush.bf16.msra.mxu0 %v2263_v7 }
  0x6c   : > { %659 = vmatmul.bf16.vlgmr.msra.gmra.mxu0 %v2262_v8 }
  0xe9   : > { %v660_v10 = vpop.f32.mrf.mxu0 }
  0xea   : > { %v661_v11 = vadd.f32 %v2501_v9, %v660_v10 }
  0xec   : > { %665 = vst [vmem:[#allocation3 + $0x8] sm:$0xff] %v661_v11 }
  0xed   : > { %667 = vst [vmem:[#allocation2] sm:$0xff] %v661_v11 }
  0xf1   : > { %v662_v12 = vpop.f32.mrf.mxu0 }
  0xf2   : > { %v663_v13 = vadd.f32 %v2501_v9, %v662_v12 }
  0xf4   : > { %666 = vst [vmem:[#allocation3] sm:$0xff] %v663_v13 }
  0xf5   : > { %668 = vst [vmem:[#allocation2 + $0x8] sm:$0xff] %v663_v13 }
  0xf6 PF: > { %v2301_v14 = vld [vmem:[%s3075_s11 + $0x74] sm:$0xf]  ;;  %v1932_v15 = vld [vmem:[%s3075_s11 + $0x78] sm:$0xf0]  ;;  %v2299_v19 = vld [vmem:[%s3075_s11 + $0x64] sm:$0xf]  ;;  %v671_v55 = vlaneseq }
  0xf7   : > { %v2285_v16 = vld [vmem:[%s3075_s11 + $0x174] sm:$0xf]  ;;  %v1935_v17 = vor.u32 %v2301_v14, %v1932_v15  ;;  %v2002_v18 = vld [vmem:[%s3075_s11 + $0x178] sm:$0xf0]  ;;  %v1924_v20 = vld [vmem:[%s3075_s11 + $0x68] sm:$0xf0] }
  0xf8   : > { %v2005_v21 = vor.u32 %v2285_v16, %v2002_v18  ;;  %v2283_v22 = vld [vmem:[%s3075_s11 + $0x164] sm:$0xf]  ;;  %v1994_v23 = vld [vmem:[%s3075_s11 + $0x168] sm:$0xf0]  ;;  %v1930_v24 = vld [vmem:[%s3075_s11 + $0x70] sm:$0xf]  ;;  %v1927_v25 = vor.u32 %v2299_v19, %v1924_v20 }
  0xf9   : > { %840 = vmatpush.bf16.msra.mxu1 %v1935_v17  ;;  %v2302_v26 = vld [vmem:[%s3075_s11 + $0x74] sm:$0xf0]  ;;  %v1997_v27 = vor.u32 %v2283_v22, %v1994_v23  ;;  %v2297_v29 = vld [vmem:[%s3075_s11 + $0x54] sm:$0xf]  ;;  %v1916_v30 = vld [vmem:[%s3075_s11 + $0x58] sm:$0xf0] }
  0xfa   : > { %948 = vmatpush.bf16.msra.mxu3 %v2005_v21  ;;  %v1931_v28 = vor.u32 %v2302_v26, %v1930_v24  ;;  %v1922_v31 = vld [vmem:[%s3075_s11 + $0x60] sm:$0xf]  ;;  %v2281_v32 = vld [vmem:[%s3075_s11 + $0x154] sm:$0xf]  ;;  %v1986_v33 = vld [vmem:[%s3075_s11 + $0x158] sm:$0xf0]  ;;  %v1919_v36 = vor.u32 %v2297_v29, %v1916_v30 }
  0xfb   : > { %v2300_v34 = vld [vmem:[%s3075_s11 + $0x64] sm:$0xf0]  ;;  %v1914_v37 = vld [vmem:[%s3075_s11 + $0x50] sm:$0xf]  ;;  %v2298_v38 = vld [vmem:[%s3075_s11 + $0x54] sm:$0xf0]  ;;  %v1989_v39 = vor.u32 %v2281_v32, %v1986_v33 }
  0xfc   : > { %826 = vmatpush.bf16.msra.mxu0 %v1931_v28  ;;  %v1923_v35 = vor.u32 %v2300_v34, %v1922_v31  ;;  %v2295_v40 = vld [vmem:[%s3075_s11 + $0x44] sm:$0xf]  ;;  %v1908_v41 = vld [vmem:[%s3075_s11 + $0x48] sm:$0xf0]  ;;  %v1915_v44 = vor.u32 %v2298_v38, %v1914_v37  ;;  %v1906_v46 = vld [vmem:[%s3075_s11 + $0x40] sm:$0xf] }
  0xfd   : > { %841 = vmatpush.bf16.msra.mxu1 %v1927_v25  ;;  %v2279_v42 = vld [vmem:[%s3075_s11 + $0x144] sm:$0xf]  ;;  %v1978_v43 = vld [vmem:[%s3075_s11 + $0x148] sm:$0xf0]  ;;  %v1911_v45 = vor.u32 %v2295_v40, %v1908_v41  ;;  %v2296_v47 = vld [vmem:[%s3075_s11 + $0x44] sm:$0xf0] }
  0xfe   : > { %949 = vmatpush.bf16.msra.mxu3 %v1997_v27  ;;  %v1981_v48 = vor.u32 %v2279_v42, %v1978_v43  ;;  %v2293_v49 = vld [vmem:[%s3075_s11 + $0x34] sm:$0xf]  ;;  %v1900_v50 = vld [vmem:[%s3075_s11 + $0x38] sm:$0xf0]  ;;  %v2000_v53 = vld [vmem:[%s3075_s11 + $0x170] sm:$0xf]  ;;  %v1907_v56 = vor.u32 %v2296_v47, %v1906_v46 }
  0xff   : > { %v2277_v51 = vld [vmem:[%s3075_s11 + $0x134] sm:$0xf]  ;;  %v1970_v52 = vld [vmem:[%s3075_s11 + $0x138] sm:$0xf0]  ;;  %v2286_v54 = vld [vmem:[%s3075_s11 + $0x174] sm:$0xf0]  ;;  %v1903_v58 = vor.u32 %v2293_v49, %v1900_v50 }
 0x100   : > { %827 = vmatpush.bf16.msra.mxu0 %v1923_v35  ;;  %v2001_v57 = vor.u32 %v2286_v54, %v2000_v53  ;;  %v2291_v59 = vld [vmem:[%s3075_s11 + $0x24] sm:$0xf]  ;;  %v1898_v60 = vld [vmem:[%s3075_s11 + $0x30] sm:$0xf]  ;;  %v2294_v61 = vld [vmem:[%s3075_s11 + $0x34] sm:$0xf0]  ;;  %v1973_v62 = vor.u32 %v2277_v51, %v1970_v52 }
 0x101   : > { %842 = vmatpush.bf16.msra.mxu1 %v1919_v36  ;;  %v1892_v63 = vld [vmem:[%s3075_s11 + $0x28] sm:$0xf0]  ;;  %v2275_v0 = vld [vmem:[%s3075_s11 + $0x124] sm:$0xf]  ;;  %v1992_v1 = vld [vmem:[%s3075_s11 + $0x160] sm:$0xf]  ;;  %v1899_v5 = vor.u32 %v2294_v61, %v1898_v60 }
 0x102   : > { %950 = vmatpush.bf16.msra.mxu3 %v1989_v39  ;;  %934 = vmatpush.bf16.msra.mxu2 %v2001_v57  ;;  %v1962_v2 = vld [vmem:[%s3075_s11 + $0x128] sm:$0xf0]  ;;  %v2284_v3 = vld [vmem:[%s3075_s11 + $0x164] sm:$0xf0]  ;;  %v3137_v4 = vshrl.u32 %v671_v55, 7  ;;  %v1895_v10 = vor.u32 %v2291_v59, %v1892_v63  ;;  %v3153_v23 = vld [vmem:[#allocation2] sm:$0xff] }
 0x103   : > { %v2289_v6 = vld [vmem:[%s3075_s11 + $0x14] sm:$0xf]  ;;  %v1884_v7 = vld [vmem:[%s3075_s11 + $0x18] sm:$0xf0]  ;;  %v1890_v8 = vld [vmem:[%s3075_s11 + $0x20] sm:$0xf]  ;;  %v1993_v9 = vor.u32 %v2284_v3, %v1992_v1  ;;  %v1965_v14 = vor.u32 %v2275_v0, %v1962_v2 }
 0x104   : > { %828 = vmatpush.bf16.msra.mxu0 %v1915_v44  ;;  %v2292_v11 = vld [vmem:[%s3075_s11 + $0x24] sm:$0xf0]  ;;  %v1984_v12 = vld [vmem:[%s3075_s11 + $0x150] sm:$0xf]  ;;  %v2282_v13 = vld [vmem:[%s3075_s11 + $0x154] sm:$0xf0]  ;;  %v1887_v26 = vor.u32 %v2289_v6, %v1884_v7 }
 0x105   : > { %843 = vmatpush.bf16.msra.mxu1 %v1911_v45  ;;  %v2273_v15 = vld [vmem:[%s3075_s11 + $0x114] sm:$0xf]  ;;  %v1954_v16 = vld [vmem:[%s3075_s11 + $0x118] sm:$0xf0]  ;;  %v1985_v17 = vor.u32 %v2282_v13, %v1984_v12  ;;  %v3148_v18 = vadd.s32 8, %v3137_v4  ;;  %v1891_v20 = vor.u32 %v2292_v11, %v1890_v8  ;;  %v716_v29 = vrot.slane %v3153_v23, 6 }
 0x106   : > { %951 = vmatpush.bf16.msra.mxu3 %v1981_v48  ;;  %935 = vmatpush.bf16.msra.mxu2 %v1993_v9  ;;  %v1882_v19 = vld [vmem:[%s3075_s11 + $0x10] sm:$0xf]  ;;  %v2287_v21 = vld [vmem:[%s3075_s11 + $0x4] sm:$0xf]  ;;  %v1876_v22 = vld [vmem:[%s3075_s11 + $0x8] sm:$0xf0]  ;;  %v1957_v27 = vor.u32 %v2273_v15, %v1954_v16 }
 0x107   : > { %v3155_v24 = vld [vmem:[#allocation2 + $0x8] sm:$0xff]  ;;  %v2290_v28 = vld [vmem:[%s3075_s11 + $0x14] sm:$0xf0]  ;;  %v2280_v31 = vld [vmem:[%s3075_s11 + $0x144] sm:$0xf0]  ;;  %v678_v33 = vand.u32 7, %v3137_v4  ;;  %v1879_v42 = vor.u32 %v2287_v21, %v1876_v22 }
 0x108   : > { %829 = vmatpush.bf16.msra.mxu0 %v1907_v56  ;;  %v1976_v25 = vld [vmem:[%s3075_s11 + $0x140] sm:$0xf]  ;;  %v717_v30 = vrot.slane %v3155_v24, 6  ;;  %v2271_v32 = vld [vmem:[%s3075_s11 + $0x104] sm:$0xf]  ;;  %v685_v34 = vand.u32 7, %v3148_v18  ;;  %v1883_v39 = vor.u32 %v2290_v28, %v1882_v19  ;;  %v698_v61 = vpack.c.bf16 %v3155_v24, %v3153_v23 }
 0x109   : > { %844 = vmatpush.bf16.msra.mxu1 %v1903_v58  ;;  %vm718_vm0 = vcmp.lt.s32.totalorder %v3137_v4, 2  ;;  %v1977_v35 = vor.u32 %v2280_v31, %v1976_v25  ;;  %v1946_v36 = vld [vmem:[%s3075_s11 + $0x108] sm:$0xf0]  ;;  %v2317_v37 = vld [vmem:[%s3075_s11 + $0xf4] sm:$0xf]  ;;  %vm3177_vm1 = vcmp.ge.s32.totalorder %v678_v33, 2 }
 0x10a   : > { %952 = vmatpush.bf16.msra.mxu3 %v1973_v62  ;;  %936 = vmatpush.bf16.msra.mxu2 %v1985_v17  ;;  %v2082_v38 = vld [vmem:[%s3075_s11 + $0xf8] sm:$0xf0]  ;;  %v1968_v40 = vld [vmem:[%s3075_s11 + $0x130] sm:$0xf]  ;;  %v2278_v41 = vld [vmem:[%s3075_s11 + $0x134] sm:$0xf0]  ;;  %v719_v45 = vsel %vm718_vm0, %v716_v29, %v717_v30  ;;  %v720_v46 = vsel %vm718_vm0, %v717_v30, %v716_v29  ;;  %v1949_v47 = vor.u32 %v2271_v32, %v1946_v36 }
 0x10b   : > { %v1874_v43 = vld [vmem:[%s3075_s11] sm:$0xf]  ;;  %v2288_v44 = vld [vmem:[%s3075_s11 + $0x4] sm:$0xf0]  ;;  %v2085_v48 = vor.u32 %v2317_v37, %v2082_v38  ;;  %v2080_v49 = vld [vmem:[%s3075_s11 + $0xf0] sm:$0xf]  ;;  %v1969_v56 = vor.u32 %v2278_v41, %v1968_v40  ;;  %v1937_v58 = vpack.c.bf16 %v719_v45, %v720_v46 }
 0x10c   : > { %830 = vmatpush.bf16.msra.mxu0 %v1899_v5  ;;  %v2318_v50 = vld [vmem:[%s3075_s11 + $0xf4] sm:$0xf0]  ;;  %vm3183_vm2 = vcmp.ge.s32.totalorder %v685_v34, 2  ;;  %v2315_v53 = vld [vmem:[%s3075_s11 + $0xe4] sm:$0xf]  ;;  %v1875_v57 = vor.u32 %v2288_v44, %v1874_v43  ;;  %v962_v45 = vrot.slane %v3153_v23, 7 }
 0x10d   : > { %845 = vmatpush.bf16.msra.mxu1 %v1895_v10  ;;  %v2074_v54 = vld [vmem:[%s3075_s11 + $0xe8] sm:$0xf0]  ;;  %v1960_v59 = vld [vmem:[%s3075_s11 + $0x120] sm:$0xf]  ;;  %v2276_v60 = vld [vmem:[%s3075_s11 + $0x124] sm:$0xf0]  ;;  %v2081_v62 = vor.u32 %v2318_v50, %v2080_v49 }
 0x10e   : > { %953 = vmatpush.bf16.msra.mxu3 %v1965_v14  ;;  %937 = vmatpush.bf16.msra.mxu2 %v1977_v35  ;;  %vm1936_vm3 = vmpackc.low %vm3183_vm2, %vm3177_vm1  ;;  %v2077_v63 = vor.u32 %v2315_v53, %v2074_v54  ;;  %v2072_v0 = vld [vmem:[%s3075_s11 + $0xe0] sm:$0xf]  ;;  %v2316_v1 = vld [vmem:[%s3075_s11 + $0xe4] sm:$0xf0]  ;;  %v1961_v5 = vor.u32 %v2276_v60, %v1960_v59  ;;  %v963_v46 = vrot.slane %v3155_v24, 7  ;;  %vm964_vm4 = vcmp.lt.s32.totalorder %v3137_v4, 1 }
 0x10f   : > { %v2313_v2 = vld [vmem:[%s3075_s11 + $0xd4] sm:$0xf]  ;;  %v2066_v3 = vld [vmem:[%s3075_s11 + $0xd8] sm:$0xf0]  ;;  %v1952_v6 = vld [vmem:[%s3075_s11 + $0x110] sm:$0xf]  ;;  %v2073_v8 = vor.u32 %v2316_v1, %v2072_v0 }
 0x110   : > { %831 = vmatpush.bf16.msra.mxu0 %v1891_v20  ;;  %v2274_v7 = vld [vmem:[%s3075_s11 + $0x114] sm:$0xf0]  ;;  %v2069_v9 = vor.u32 %v2313_v2, %v2066_v3  ;;  %v2064_v10 = vld [vmem:[%s3075_s11 + $0xd0] sm:$0xf]  ;;  %v2311_v12 = vld [vmem:[%s3075_s11 + $0xc4] sm:$0xf]  ;;  %v965_v51 = vsel %vm964_vm4, %v962_v45, %v963_v46  ;;  %v966_v52 = vsel %vm964_vm4, %v963_v46, %v962_v45 }
 0x111   : > { %846 = vmatpush.bf16.msra.mxu1 %v1887_v26  ;;  %v2314_v11 = vld [vmem:[%s3075_s11 + $0xd4] sm:$0xf0]  ;;  %v2058_v13 = vld [vmem:[%s3075_s11 + $0xc8] sm:$0xf0]  ;;  %v1953_v14 = vor.u32 %v2274_v7, %v1952_v6  ;;  %v1944_v15 = vld [vmem:[%s3075_s11 + $0x100] sm:$0xf] }
 0x112   : > { %954 = vmatpush.bf16.msra.mxu3 %v1957_v27  ;;  %938 = vmatpush.bf16.msra.mxu2 %v1969_v56  ;;  %v2272_v16 = vld [vmem:[%s3075_s11 + $0x104] sm:$0xf0]  ;;  %v2065_v17 = vor.u32 %v2314_v11, %v2064_v10  ;;  %v2061_v19 = vor.u32 %v2311_v12, %v2058_v13  ;;  %v2056_v20 = vld [vmem:[%s3075_s11 + $0xc0] sm:$0xf]  ;;  %v2309_v22 = vld [vmem:[%s3075_s11 + $0xb4] sm:$0xf]  ;;  %v2087_v56 = vpack.c.bf16 %v965_v51, %v966_v52 }
 0x113   : > { %v2312_v21 = vld [vmem:[%s3075_s11 + $0xc4] sm:$0xf0]  ;;  %v2050_v25 = vld [vmem:[%s3075_s11 + $0xb8] sm:$0xf0]  ;;  %v1945_v26 = vor.u32 %v2272_v16, %v1944_v15  ;;  %v2048_v29 = vld [vmem:[%s3075_s11 + $0xb0] sm:$0xf] }
 0x114   : > { %832 = vmatpush.bf16.msra.mxu0 %v1883_v39  ;;  %v2057_v27 = vor.u32 %v2312_v21, %v2056_v20  ;;  %v2053_v28 = vor.u32 %v2309_v22, %v2050_v25  ;;  %v2310_v30 = vld [vmem:[%s3075_s11 + $0xb4] sm:$0xf0]  ;;  %v2307_v31 = vld [vmem:[%s3075_s11 + $0xa4] sm:$0xf]  ;;  %v2042_v32 = vld [vmem:[%s3075_s11 + $0xa8] sm:$0xf0] }
 0x115   : > { %847 = vmatpush.bf16.msra.mxu1 %v1879_v42  ;;  %v2049_v35 = vor.u32 %v2310_v30, %v2048_v29  ;;  %v2045_v36 = vor.u32 %v2307_v31, %v2042_v32  ;;  %v2040_v37 = vld [vmem:[%s3075_s11 + $0xa0] sm:$0xf]  ;;  %v2308_v38 = vld [vmem:[%s3075_s11 + $0xa4] sm:$0xf0]  ;;  %v2305_v39 = vld [vmem:[%s3075_s11 + $0x94] sm:$0xf] }
 0x116   : > { %955 = vmatpush.bf16.msra.mxu3 %v1949_v47  ;;  %939 = vmatpush.bf16.msra.mxu2 %v1961_v5  ;;  %v2034_v40 = vld [vmem:[%s3075_s11 + $0x98] sm:$0xf0]  ;;  %v2041_v41 = vor.u32 %v2308_v38, %v2040_v37  ;;  %v2032_v43 = vld [vmem:[%s3075_s11 + $0x90] sm:$0xf]  ;;  %v2306_v44 = vld [vmem:[%s3075_s11 + $0x94] sm:$0xf0] }
 0x117   : > { %v2037_v42 = vor.u32 %v2305_v39, %v2034_v40  ;;  %v2303_v47 = vld [vmem:[%s3075_s11 + $0x84] sm:$0xf]  ;;  %v2033_v49 = vor.u32 %v2306_v44, %v2032_v43  ;;  %v2024_v53 = vld [vmem:[%s3075_s11 + $0x80] sm:$0xf]  ;;  %v2304_v54 = vld [vmem:[%s3075_s11 + $0x84] sm:$0xf0] }
 0x118   : > { %833 = vmatpush.bf16.msra.mxu0 %v1875_v57  ;;  %1941 = vmatmul.msk.bf16.vlgmr.msra.gmra.mxu1 %vm1936_vm3, %v1937_v58  ;;  %vm967_vm5 = vcmp.ge.s32.totalorder %v678_v33, 1  ;;  %vm968_vm6 = vcmp.ge.s32.totalorder %v685_v34, 1  ;;  %v2025_v57 = vor.u32 %v2304_v54, %v2024_v53  ;;  %v2325_v4 = vld [vmem:[%s3095_s22 + $0x30] sm:$0xff]  ;;  %v2324_v33 = vld [vmem:[%s3095_s22 + $0x28] sm:$0xff]  ;;  %v2323_v34 = vld [vmem:[%s3095_s22 + $0x20] sm:$0xff]  ;;  %p2254_p3 = scmp.ne.s32.totalorder %s2847_s16, 1 }
 0x119   : > { %1087 = vmatpush.bf16.msrb.mxu1 %v2085_v48  ;;  %956 = vmatmul.bf16.vlgmr.msra.gmra.mxu3 %v698_v61  ;;  %v2026_v48 = vld [vmem:[%s3075_s11 + $0x88] sm:$0xf0]  ;;  %vm2086_vm7 = vmpackc.low %vm968_vm6, %vm967_vm5  ;;  %v2321_v5 = vld [vmem:[%s3095_s22 + $0x10] sm:$0xff] }
 0x11a   : > { %940 = vmatpush.bf16.msra.mxu2 %v1953_v14  ;;  %v2029_v50 = vor.u32 %v2303_v47, %v2026_v48  ;;  %v2319_v13 = vld [vmem:[%s3095_s22] sm:$0xff]  ;;  %v2342_v21 = vld [vmem:[#allocation10 + $0x78] sm:$0xff]  ;;  %v2333_v22 = vld [vmem:[#allocation10 + $0x30] sm:$0xff] }
 0x11b   : > { %1938 = vmatmul.msk.bf16.vlgmr.msra.gmra.mxu0 %vm1936_vm3, %v1937_v58  ;;  %v2326_v58 = vld [vmem:[%s3095_s22 + $0x38] sm:$0xff]  ;;  %v2341_v25 = vld [vmem:[#allocation10 + $0x70] sm:$0xff]  ;;  %v2339_v37 = vld [vmem:[#allocation10 + $0x60] sm:$0xff] }
 0x11c   : > { %1073 = vmatpush.bf16.msrb.mxu0 %v2081_v62  ;;  %v2322_v62 = vld [vmem:[%s3095_s22 + $0x18] sm:$0xff]  ;;  %v2329_v48 = vld [vmem:[#allocation10 + $0x10] sm:$0xff] }
 0x11d   : > { %1088 = vmatpush.bf16.msrb.mxu1 %v2077_v63 }
 0x11e   : > { %941 = vmatpush.bf16.msra.mxu2 %v1945_v26 }
 0x120   : > { %1074 = vmatpush.bf16.msrb.mxu0 %v2073_v8 }
 0x121   : > { %1089 = vmatpush.bf16.msrb.mxu1 %v2069_v9  ;;  %942 = vmatmul.bf16.vlgmr.msra.gmra.mxu2 %v698_v61  ;;  %v3249_v61 = vld [vmem:[%s3093_s20] sm:$0x3]  ;;  %v2320_v9 = vld [vmem:[%s3095_s22 + $0x8] sm:$0xff] }
 0x122   : > { %1224 = vmatpush.bf16.msrb.mxu2 %v2326_v58  ;;  %v1108_v0 = vperm.slane %v3249_v61, 1  ;;  %v1107_v53 = vperm.slane %v3249_v61, 0 }
 0x124   : > { %1075 = vmatpush.bf16.msrb.mxu0 %v2065_v17 }
 0x125   : > { %1090 = vmatpush.bf16.msrb.mxu1 %v2061_v19  ;;  %v2334_v19 = vld [vmem:[#allocation10 + $0x38] sm:$0xff] }
 0x126   : > { %1225 = vmatpush.bf16.msrb.mxu2 %v2325_v4  ;;  %1330 = vmatpush.bf16.msrb.mxu3 %v2334_v19  ;;  %v1239_v19 = vld [vmem:[#allocation3] sm:$0xff] }
 0x128   : > { %1076 = vmatpush.bf16.msrb.mxu0 %v2057_v27  ;;  %v2332_v27 = vld [vmem:[#allocation10 + $0x28] sm:$0xff] }
 0x129   : > { %1091 = vmatpush.bf16.msrb.mxu1 %v2053_v28  ;;  %v2340_v28 = vld [vmem:[#allocation10 + $0x68] sm:$0xff] }
 0x12a   : > { %1226 = vmatpush.bf16.msrb.mxu2 %v2324_v33  ;;  %1331 = vmatpush.bf16.msrb.mxu3 %v2333_v22 }
 0x12c   : > { %1077 = vmatpush.bf16.msrb.mxu0 %v2049_v35 }
 0x12d   : > { %1092 = vmatpush.bf16.msrb.mxu1 %v2045_v36  ;;  %v2331_v36 = vld [vmem:[#allocation10 + $0x20] sm:$0xff] }
 0x12e   : > { %1227 = vmatpush.bf16.msrb.mxu2 %v2323_v34  ;;  %1332 = vmatpush.bf16.msrb.mxu3 %v2332_v27 }
 0x130   : > { %1078 = vmatpush.bf16.msrb.mxu0 %v2041_v41  ;;  %v2330_v41 = vld [vmem:[#allocation10 + $0x18] sm:$0xff] }
 0x131   : > { %1093 = vmatpush.bf16.msrb.mxu1 %v2037_v42 }
 0x132   : > { %1228 = vmatpush.bf16.msrb.mxu2 %v2322_v62  ;;  %1333 = vmatpush.bf16.msrb.mxu3 %v2331_v36 }
 0x134   : > { %1079 = vmatpush.bf16.msrb.mxu0 %v2033_v49 }
 0x135   : > { %1094 = vmatpush.bf16.msrb.mxu1 %v2029_v50 }
 0x136   : > { %1229 = vmatpush.bf16.msrb.mxu2 %v2321_v5  ;;  %1334 = vmatpush.bf16.msrb.mxu3 %v2330_v41  ;;  %v2338_v5 = vld [vmem:[#allocation10 + $0x58] sm:$0xff]  ;;  %v2356_v41 = vld [vmem:[#allocation12 + $0x68] sm:$0xff] }
 0x138   : > { %2091 = vmatmul.msk.bf16.vlgmr.msrb.gmra.mxu1 %vm2086_vm7, %v2087_v56  ;;  %1080 = vmatpush.bf16.msrb.mxu0 %v2025_v57 }
 0x13a   : > { %1230 = vmatpush.bf16.msrb.mxu2 %v2320_v9  ;;  %1335 = vmatpush.bf16.msrb.mxu3 %v2329_v48  ;;  %v2335_v9 = vld [vmem:[#allocation10 + $0x40] sm:$0xff] }
 0x13b   : > { %2088 = vmatmul.msk.bf16.vlgmr.msrb.gmra.mxu0 %vm2086_vm7, %v2087_v56 }
 0x13c   : > { %1391 = vmatpush.bf16.msra.mxu0 %v2342_v21 }
 0x13e   : > { %1231 = vmatpush.bf16.msrb.mxu2 %v2319_v13 }
 0x140   : > { %1392 = vmatpush.bf16.msra.mxu0 %v2341_v25 }
 0x144   : > { %1393 = vmatpush.bf16.msra.mxu0 %v2340_v28  ;;  %v2866_v28 = vmov -1e+30  }
 0x148   : > { %1394 = vmatpush.bf16.msra.mxu0 %v2339_v37  ;;  %v2358_v37 = vld [vmem:[#allocation12 + $0x78] sm:$0xff] }
 0x149   : > { %1565 = vmatpush.bf16.msra.mxu2 %v2358_v37 }
 0x14c   : > { %1395 = vmatpush.bf16.msra.mxu0 %v2338_v5 }
 0x195   : > { %v849_v59 = vpop.f32.mrf.mxu1 }
 0x198   : > { %v835_v2 = vpop.f32.mrf.mxu0 }
 0x19c   : > { %v957_v60 = vpop.f32.mrf.mxu3 }
 0x19d   : > { %v851_v18 = vpop.f32.mrf.mxu1  ;;  %v958_v63 = vadd.f32 %v957_v60, %v849_v59 }
 0x1a0   : > { %v837_v14 = vpop.f32.mrf.mxu0 }
 0x1a4   : > { %v959_v7 = vpop.f32.mrf.mxu3  ;;  %v943_v26 = vpop.f32.mrf.mxu2 }
 0x1a5   : > { %v960_v10 = vadd.f32 %v959_v7, %v851_v18  ;;  %v944_v43 = vadd.f32 %v943_v26, %v835_v2  ;;  %v2337_v7 = vld [vmem:[#allocation10 + $0x50] sm:$0xff]  ;;  %v1279_v26 = vand.u32 127, %v671_v55  ;;  %v2348_v55 = vld [vmem:[#allocation12 + $0x28] sm:$0xff] }
 0x1a6   : > { %1396 = vmatpush.bf16.msra.mxu0 %v2337_v7 }
 0x1a7   : > { %vm1280_vm0 = vcmp.lt.s32.totalorder %v1279_v26, 16 }
 0x1ac   : > { %v945_v40 = vpop.f32.mrf.mxu2 }
 0x1ad   : > { %v946_v44 = vadd.f32 %v945_v40, %v837_v14  ;;  %v2349_v40 = vld [vmem:[#allocation12 + $0x30] sm:$0xff] }
 0x1b5   : > { %v1096_v1 = vpop.f32.mrf.mxu1 }
 0x1b6   : > { %v1102_v3 = vadd.f32 %v1096_v1, %v958_v63 }
 0x1b8   : > { %v1112_v6 = vadd.f32 %v1108_v0, %v1102_v3  ;;  %v1082_v30 = vpop.f32.mrf.mxu0  ;;  %v2328_v3 = vld [vmem:[#allocation10 + $0x8] sm:$0xff] }
 0x1b9   : > { %v1101_v52 = vadd.f32 %v1082_v30, %v944_v43  ;;  %1336 = vmatpush.bf16.msrb.mxu3 %v2328_v3 }
 0x1ba   : > { %v2092_v8 = vmul.f32 -1.442695, %v1112_v6  ;;  %v2327_v6 = vld [vmem:[#allocation10] sm:$0xff] }
 0x1bb   : > { %v1111_v60 = vadd.f32 %v1107_v53, %v1101_v52  ;;  %v2347_v52 = vld [vmem:[#allocation12 + $0x20] sm:$0xff] }
 0x1bc   : > { %2503 = vpow2.f32 %v2092_v8  ;;  %v2336_v8 = vld [vmem:[#allocation10 + $0x48] sm:$0xff] }
 0x1bd   : > { %v1098_v11 = vpop.f32.mrf.mxu1  ;;  %1337 = vmatpush.bf16.msrb.mxu3 %v2327_v6  ;;  %1397 = vmatpush.bf16.msra.mxu0 %v2336_v8 }
 0x1be   : > { %v1104_v12 = vadd.f32 %v1098_v11, %v960_v10  ;;  %v2502_v10 = vld [vmem:[%s568_s18] ss:$0 sm:$0xff] }
 0x1c0   : > { %v1114_v15 = vadd.f32 %v1108_v0, %v1104_v12  ;;  %v1084_v46 = vpop.f32.mrf.mxu0  ;;  %v1238_v12 = vld [vmem:[#allocation3 + $0x8] sm:$0xff] }
 0x1c1   : > { %v1103_v54 = vadd.f32 %v1084_v46, %v946_v44  ;;  %1398 = vmatpush.bf16.msra.mxu0 %v2335_v9 }
 0x1c2   : > { %v2504_v16 = vpop.eup %2503  ;;  %v2093_v17 = vmul.f32 -1.442695, %v1114_v15 }
 0x1c3   : > { %v1121_v20 = vadd.f32 1.0, %v2504_v16  ;;  %v1113_v62 = vadd.f32 %v1107_v53, %v1103_v54  ;;  %v2353_v53 = vld [vmem:[#allocation12 + $0x50] sm:$0xff]  ;;  %v2346_v54 = vld [vmem:[#allocation12 + $0x18] sm:$0xff] }
 0x1c4   : > { %2505 = vpow2.f32 %v2093_v17 }
 0x1c5   : > { %2507 = vrcp.f32 %v1121_v20  ;;  %v1134_v49 = vand.u32 2147483648, %v1121_v20  ;;  %vm1128_vm9 = vweird.f32 %v1121_v20  ;;  %v1132_v50 = vand.u32 2147483647, %v1121_v20 }
 0x1c7   : > { %v1135_v4 = vor.u32 1.1754944e-38, %v1134_v49  ;;  %vm1133_vm12 = vcmp.eq.f32.partialorder %v1132_v50, 8.507059e+37 }
 0x1ca   : > { %v2506_v29 = vpop.eup %2505 }
 0x1cb   : > { %v2508_v31 = vpop.eup %2507  ;;  %v1122_v32 = vadd.f32 1.0, %v2506_v29  ;;  %v1281_v29 = vsel %vm1280_vm0, 0.0, %v2866_v28 }
 0x1cc   : > { %v1124_v35 = vmul.f32 %v2508_v31, %v1121_v20  ;;  %vm1129_vm8 = vweird.f32 %v2508_v31 }
 0x1cd   : > { %2509 = vrcp.f32 %v1122_v32  ;;  %vm1130_vm10 = vmor %vm1128_vm9, %vm1129_vm8  ;;  %v1149_v56 = vand.u32 2147483648, %v1122_v32  ;;  %v1147_v59 = vand.u32 2147483647, %v1122_v32  ;;  %vm1143_vm13 = vweird.f32 %v1122_v32 }
 0x1ce   : > { %v1125_v38 = vsub.f32 1.0, %v1124_v35 }
 0x1cf   : > { %v1150_v34 = vor.u32 1.1754944e-38, %v1149_v56  ;;  %vm1148_vm15 = vcmp.eq.f32.partialorder %v1147_v59, 8.507059e+37  ;;  %v2352_v56 = vld [vmem:[#allocation12 + $0x48] sm:$0xff] }
 0x1d0   : > { %v1126_v39 = vmul.f32 %v2508_v31, %v1125_v38  ;;  %v2350_v38 = vld [vmem:[#allocation12 + $0x38] sm:$0xff]  ;;  %v2344_v59 = vld [vmem:[#allocation12 + $0x8] sm:$0xff] }
 0x1d1   : > { %1504 = vmatpush.bf16.msra.mxu1 %v2350_v38 }
 0x1d2   : > { %v1127_v45 = vadd.f32 %v2508_v31, %v1126_v39  ;;  %v2357_v39 = vld [vmem:[#allocation12 + $0x70] sm:$0xff] }
 0x1d3   : > { %v2510_v42 = vpop.eup %2509  ;;  %1566 = vmatpush.bf16.msra.mxu2 %v2357_v39 }
 0x1d4   : > { %v1139_v47 = vmul.f32 %v2510_v42, %v1122_v32  ;;  %v1131_v57 = vsel %vm1130_vm10, %v2508_v31, %v1127_v45  ;;  %vm1144_vm11 = vweird.f32 %v2510_v42  ;;  %v2354_v45 = vld [vmem:[#allocation12 + $0x58] sm:$0xff] }
 0x1d5   : > { %v1136_v18 = vsel %vm1133_vm12, %v1135_v4, %v1131_v57  ;;  %vm1145_vm14 = vmor %vm1143_vm13, %vm1144_vm11  ;;  %1505 = vmatpush.bf16.msra.mxu1 %v2349_v40  ;;  %v2345_v57 = vld [vmem:[#allocation12 + $0x10] sm:$0xff]  ;;  %v2343_v4 = vld [vmem:[#allocation12] sm:$0xff] }
 0x1d6   : > { %v1140_v51 = vsub.f32 1.0, %v1139_v47  ;;  %v3257_v0 = vmul.f32 %v1136_v18, %v1111_v60 }
 0x1d7   : > { %1567 = vmatpush.bf16.msra.mxu2 %v2356_v41 }
 0x1d8   : > { %v1141_v58 = vmul.f32 %v2510_v42, %v1140_v51 }
 0x1d9   : > { %1506 = vmatpush.bf16.msra.mxu1 %v2348_v55 }
 0x1da   : > { %v1142_v33 = vadd.f32 %v2510_v42, %v1141_v58  ;;  %v2351_v58 = vld [vmem:[#allocation12 + $0x40] sm:$0xff] }
 0x1dc   : > { %v1146_v63 = vsel %vm1145_vm14, %v2510_v42, %v1142_v33  ;;  %v2355_v42 = vld [vmem:[#allocation12 + $0x60] sm:$0xff] }
 0x1dd   : > { %v1151_v61 = vsel %vm1148_vm15, %v1150_v34, %v1146_v63  ;;  %1568 = vmatpush.bf16.msra.mxu2 %v2355_v42  ;;  %1507 = vmatpush.bf16.msra.mxu1 %v2347_v52 }
 0x1de   : > { %v3259_v1 = vmul.f32 %v1151_v61, %v1113_v62 }
 0x1e0   : > { %v1155_v2 = vpack.c.bf16 %v3259_v1, %v3257_v0 }
 0x1e1   : > { %1569 = vmatpush.bf16.msra.mxu2 %v2354_v45  ;;  %1508 = vmatpush.bf16.msra.mxu1 %v2346_v54 }
 0x1e2   : > { %1232 = vmatmul.bf16.vlgmr.msrb.gmra.mxu2 %v1155_v2 }
 0x1e5   : > { %1570 = vmatpush.bf16.msra.mxu2 %v2353_v53  ;;  %1509 = vmatpush.bf16.msra.mxu1 %v2345_v57 }
 0x1e9   : > { %1571 = vmatpush.bf16.msra.mxu2 %v2352_v56  ;;  %1510 = vmatpush.bf16.msra.mxu1 %v2344_v59 }
 0x1ed   : > { %1572 = vmatpush.bf16.msra.mxu2 %v2351_v58  ;;  %1511 = vmatpush.bf16.msra.mxu1 %v2343_v4 }
 0x265   : > { %v1233_v11 = vpop.f32.mrf.mxu2 }
 0x266   : > { %v1234_v13 = vadd.f32 %v2502_v10, %v1233_v11 }
 0x268   : > { %v1240_v14 = vadd.f32 %v1238_v12, %v1234_v13 }
 0x26a   : > { %v1242_v15 = vmul.f32 0.70710677, %v1240_v14 }
 0x26c   : > { %v1244_v16 = vpack.c.bf16 %v1242_v15, %v1242_v15 }
 0x26d   : > { %v1235_v17 = vpop.f32.mrf.mxu2 }
 0x26e   : > { %v1236_v20 = vadd.f32 %v2502_v10, %v1235_v17  ;;  %1338 = vmatmul.bf16.vlgmr.msrb.gmra.mxu3 %v1244_v16 }
 0x270   : > { %v1241_v21 = vadd.f32 %v1239_v19, %v1236_v20 }
 0x272   : > { %v1243_v22 = vmul.f32 0.70710677, %v1241_v21 }
 0x274   : > { %v1245_v25 = vpack.c.bf16 %v1243_v22, %v1243_v22 }
 0x276   : > { %1399 = vmatmul.bf16.vlgmr.msra.gmra.mxu0 %v1245_v25 }
 0x2f1   : > { %v1339_v27 = vpop.f32.mrf.mxu3 }
 0x2f2   : > { %v1340_v36 = vadd.f32 %v1339_v27, %v1281_v29 }
 0x2f3   : > { %v1400_v30 = vpop.f32.mrf.mxu0 }
 0x2f4   : > { %v1401_v31 = vadd.f32 %v1400_v30, %v1281_v29 }
 0x2f6   : > { %1406 = vmax.xlane.f32.xlu0 %v1401_v31 }
 0x2f9   : > { %v1341_v32 = vpop.f32.mrf.mxu3 }
 0x2fb   : > { %v1402_v35 = vpop.f32.mrf.mxu0 }
 0x2fe   : > { %1404 = vmax.xlane.f32.xlu0 %v1340_v36 }
 0x369   : > { %v1407_v43 = vpop.xlane.xlu0 %1406 }
 0x36a   : > { %v1409_v44 = vsub.f32 %v1401_v31, %v1407_v43 }
 0x36c   : > { %v1412_v46 = vmul.f32 1.442695, %v1409_v44 }
 0x36e   : > { %2511 = vpow2.f32 %v1412_v46 }
 0x371   : > { %v1405_v47 = vpop.xlane.xlu0 %1404 }
 0x372   : > { %v1408_v48 = vsub.f32 %v1340_v36, %v1405_v47 }
 0x374   : > { %v2512_v49 = vpop.eup %2511  ;;  %v1410_v50 = vmul.f32 1.442695, %v1408_v48 }
 0x375   : > { %1416 = vadd.xlane.f32.xlu1 %v2512_v49 }
 0x376   : > { %2513 = vpow2.f32 %v1410_v50 }
 0x37c   : > { %v2514_v51 = vpop.eup %2513 }
 0x37d   : > { %1414 = vadd.xlane.f32.xlu1 %v2514_v51 }
 0x3e8   : > { %v1417_v33 = vpop.xlane.xlu1 %1416 }
 0x3e9   : > { %2515 = vrcp.f32 %v1417_v33 }
 0x3ef   : > { %v2516_v18 = vpop.eup %2515 }
 0x3f0   : > { %v1421_v34 = vmul.f32 %v2516_v18, %v2512_v49  ;;  %v1415_v60 = vpop.xlane.xlu1 %1414 }
 0x3f1   : > { %2517 = vrcp.f32 %v1415_v60 }
 0x3f2   : > { %v1423_v62 = vpack.c.bf16 %v1421_v34, %v1421_v34 }
 0x3f4   : > { %1573 = vmatmul.bf16.vlgmr.msra.gmra.mxu2 %v1423_v62 }
 0x3f7   : > { %v2518_v63 = vpop.eup %2517 }
 0x3f8   : > { %v1420_v61 = vmul.f32 %v2518_v63, %v2514_v51 }
 0x3fa   : > { %v1422_v2 = vpack.c.bf16 %v1420_v61, %v1420_v61 }
 0x3fc   : > { %1512 = vmatmul.bf16.vlgmr.msra.gmra.mxu1 %v1422_v2 }
 0x477   : > { %v1574_v3 = vpop.f32.mrf.mxu2 }
 0x478   : > { %v1579_v5 = vadd.f32 %v1574_v3, %v3259_v1 }
 0x479   : > { %v1513_v6 = vpop.f32.mrf.mxu1 }
 0x47a   : > { %v1581_v7 = vmul.f32 0.70710677, %v1579_v5  ;;  %v1578_v8 = vadd.f32 %v1513_v6, %v3257_v0 }
 0x47c   : > { %v1583_v9 = vadd.f32 %v1581_v7, %v3155_v24  ;;  %v1580_v10 = vmul.f32 0.70710677, %v1578_v8 }
 0x47e   : > { %v1585_v11 = vmul.f32 0.70710677, %v1583_v9  ;;  %v1582_v12 = vadd.f32 %v1580_v10, %v3153_v23  ;;  %1591 = sbr.rel (%p2254_p3) target bundleno = 1158 (0x486), region = 92 }
 0x47f   : > { %v1576_v13 = vpop.f32.mrf.mxu2 }
 0x480   : > { %1587 = vst [vmem:[#allocation2 + $0x8] sm:$0xff] %v1585_v11  ;;  %v1584_v14 = vmul.f32 0.70710677, %v1582_v12 }
 0x481   : > { %v1515_v15 = vpop.f32.mrf.mxu1 }
 0x482   : > { %1586 = vst [vmem:[#allocation2] sm:$0xff] %v1584_v14 }
 0x483   : > { %1592 = vst [vmem:[#allocation16] sm:$0xff] %v1584_v14  ;;  %v2362_v1 = vpack.c.bf16 %v1421_v34, %v1420_v61 }
 0x484   : > { %1593 = vst [vmem:[#allocation16 + $0x8] sm:$0xff] %v1585_v11 }
 0x485   : > { %2363 = vst [vmem:[#allocation17] sm:$0xff] %v2362_v1  }
 0x486 PF: > { %p2433_p4 = scmp.eq.s32.totalorder %s2959_s19, 1  ;;  %s3351_s10 = sld [smem:[#allocation32_spill]] }
 0x487   : > { %s2867_s5 = smov [#allocation16]   ;;  %s2868_s16 = smov 128  }
 0x488   : > { %s1604_s15 = sshll.u32 %s2867_s5, 4  ;;  %s2869_s23 = smov 8   ;;  %s1605_s15 = int_to_ptr.vmem [resolvable:$true] %s1604_s15 }
 0x489   : > { %s2870_s29 = smov [#allocation17]   ;;  %s3352_s13 = sld [smem:[#allocation33_spill]] }
 0x48a   : > { %s1621_s11 = sshll.u32 %s2870_s29, 4  ;;  %s2871_s9 = smov 64   ;;  %s1622_s11 = int_to_ptr.vmem [resolvable:$true] %s1621_s11 }
 0x48b   : > { %s2872_s18 = smov 4  }
 0x48c   : > { %s1606_s27 = sshll.u32 %s3351_s10, 4  ;;  %s1607_s27 = int_to_ptr.hbm [resolvable:$true] %s1606_s27 }
 0x48d   : > { %2392 = dma.vmem_to_hbm [thread:$0]  (%p2433_p4), %s1605_s15, 256, %s1607_s27, [#allocation6], %s2868_s16, %s2868_s16, %s2869_s23  }
 0x48f   : > { %s1623_s21 = sshll.u32 %s3352_s13, 4  ;;  %s1624_s21 = int_to_ptr.hbm [resolvable:$true] %s1623_s21 }
 0x490   : > { %2394 = dma.vmem_to_hbm [thread:$0]  (%p2433_p4), %s1622_s11, 128, %s1624_s21, [#allocation18], %s2871_s9, %s2871_s9, %s2872_s18  }
 0x491   : > { %2826 = dma.done.wait (%p2433_p4), [#allocation6], 256  }
 0x492   : > { %2828 = vsyncadd (%p2433_p4), [#allocation6], 4294967040 }
 0x493   : > { %2830 = dma.done.wait (%p2433_p4), [#allocation18], 128  }
 0x494   : > { %2832 = vsyncadd (%p2433_p4), [#allocation18], 4294967168 }
 0x495 PF: > { %s3353_s28 = sld [smem:[#allocation26_spill]]  ;;  %s3357_s13 = smov %s2839_s14 }
 0x496   : > { %s3354_s24 = sld [smem:[#allocation25_spill]]  ;;  %s3359_s16 = smov %s2851_s17 }
 0x497   : > { %s3355_s15 = sld [smem:[#allocation28_spill]] }
 0x498   : > { %s3356_s20 = sld [smem:[#allocation27_spill]] }
 0x49b   : > { %s29_s18 = sadd.s32 1, %s3353_s28  }
 0x49c   : > { %p26_p5 = scmp.ge.s32.totalorder %s29_s18, 4   ;;  %s3358_s14 = smov %s3354_s24 }
 0x49e   : > { %s3360_s17 = smov %s3356_s20  ;;  %28 = sbr.rel (!%p26_p5) target bundleno = 15 (0xf), region = 154 }
 0x4a3   :  { %1645 = vsyncpa [#allocation5], 1 }
 0x4a4   :  { %1647 = vsyncpa [#allocation5 + $0x1], 1 }
 0x4a5   :  { %1648 = vsyncpa [#allocation8], 1 }
 0x4a6   :  { %1649 = vsyncpa [#allocation11], 1 }
 0x4a7   :  { %1650 = vsyncpa [#allocation14], 1 }
 0x4a8   :  { %1652 = vsyncpa [#allocation14 + $0x1], 1 }
 0x4a9   :  { %1653 = vsyncpa [#allocation6], 1 }
 0x4aa   :  { %1655 = vsyncpa [#allocation6 + $0x1], 1 }
 0x4ab   :  { %1656 = vsyncpa [#allocation18], 1 }

// kernel: tpu_custom_call.1
= control target key start
LH: loop header
LB: loop body
LE: loop exit
PB: predicated region body
PF: predicated region fallthrough
CT: control target
= control target key end

     0   :  { %s3311_s0 = inlined_call_operand.hbm [shape: bf16[2,8,128], index: 0, kind: input, shape index: {}]   ;;  %s3312_s1 = inlined_call_operand.hbm [shape: bf16[128,128], index: 1, kind: input, shape index: {}]   ;;  %s3313_s2 = inlined_call_operand.hbm [shape: f32[1,128], index: 2, kind: input, shape index: {}]   ;;  %s3314_s3 = inlined_call_operand.hbm [shape: bf16[2,128,128], index: 3, kind: input, shape index: {}]   ;;  %s3315_s4 = inlined_call_operand.hbm [shape: bf16[2,128,128], index: 4, kind: input, shape index: {}]   ;;  %s3316_s5 = inlined_call_operand.hbm [shape: bf16[2,3,128,256], index: 5, kind: input, shape index: {}]   ;;  %s3317_s6 = inlined_call_operand.vmem [shape: f32[2,1,256], index: 6, kind: input, shape index: {}]   ;;  %s3318_s7 = inlined_call_operand.hbm [shape: bf16[2,128,128], index: 7, kind: input, shape index: {}]   ;;  %s3319_s8 = inlined_call_operand.vmem [shape: f32[2,1,128], index: 8, kind: input, shape index: {}]   ;;  %s3320_s9 = inlined_call_operand.hbm [shape: f32[2,8,128], index: 9, kind: output, shape index: {0}]   ;;  %s3321_s10 = inlined_call_operand.hbm [shape: bf16[2,8,128], index: 10, kind: output, shape index: {1}]  }
   0x1   :  { %3329 = sst [smem:[#allocation29_spill]] %s3312_s1 }
   0x2   :  { %3330 = sst [smem:[#allocation30_spill]] %s3314_s3 }
   0x3   :  { %3331 = sst [smem:[#allocation31_spill]] %s3316_s5 }
   0x4   :  { %3332 = sst [smem:[#allocation32_spill]] %s3320_s9 }
   0x5   :  { %3333 = sst [smem:[#allocation33_spill]] %s3321_s10 }
   0x6   :  { %16 = vsyncpa [#allocation5], 0 }
   0x7   :  { %17 = vsyncpa [#allocation8], 0 }
   0x8   :  { %18 = vsyncpa [#allocation11], 0 }
   0x9   :  { %19 = vsyncpa [#allocation14], 0 }
   0xa   :  { %21 = vsyncpa [#allocation14 + $0x1], 0 }
   0xb   :  { %22 = vsyncpa [#allocation6], 0 }
   0xc   :  { %23 = vsyncpa [#allocation18], 0  ;;  %s2928_s13 = smov 0   ;;  %s2930_s14 = smov 0  }
   0xd   :  { %s2932_s15 = smov 0   ;;  %s2934_s16 = smov 0  }
   0xe   :  { %s2936_s17 = smov 0   ;;  %s2938_s18 = smov 0  }
   0xf LB: > { %3334 = sst [smem:[#allocation25_spill]] %s2843_s15  ;;  %s2959_s19 = sadd.s32 4294967295, %s2855_s18   ;;  %s2855_s18 = sphi %s2938_s18, %s29_s18   ;;  %s2851_s17 = sphi %s2936_s17, %s3360_s17   ;;  %s2847_s16 = sphi %s2934_s16, %s3359_s16   ;;  %s2843_s15 = sphi %s2932_s15, %s3355_s15   ;;  %s2839_s14 = sphi %s2930_s14, %s3358_s14   ;;  %s2835_s13 = sphi %s2928_s13, %s3357_s13  }
  0x10   : > { %3335 = sst [smem:[#allocation26_spill]] %s2855_s18  ;;  %p1800_p0 = scmp.ge.s32.totalorder %s2855_s18, 1 }
  0x11   : > { %p182_p1 = scmp.eq.s32.totalorder %s2959_s19, 0  ;;  %p322_p2 = scmp.lt.s32.totalorder %s2855_s18, 3 }
  0x12   : > { %s3336_s1 = sld [smem:[#allocation29_spill]]  ;;  %s2857_s24 = smov [#allocation7]  }
  0x13   : > { %p2967_p3 = pnand %p1800_p0, %p322_p2  ;;  %s352_s25 = sshll.u32 %s2857_s24, 4  ;;  %s353_s25 = int_to_ptr.vmem [resolvable:$true] %s352_s25 }
  0x14   : > { %s3338_s3 = sld [smem:[#allocation30_spill]]  ;;  %s2858_s30 = smov [#allocation10]  }
  0x15   : > { %p2399_p4 = pneg %p2967_p3  ;;  %s382_s11 = sshll.u32 %s2858_s30, 4  ;;  %s383_s11 = int_to_ptr.vmem [resolvable:$true] %s382_s11 }
  0x16   : > { %s3322_s12 = smov 64   ;;  %s3324_s20 = smov 4  }
  0x17   : > { %p2978_p5 = pnand %p2399_p4, %p182_p1  ;;  %s38_s21 = sadd.s32 1, %s2851_s17 }
  0x18   : > { %s350_s22 = sshll.u32 %s3336_s1, 4  ;;  %s168_s24 = sadd.s32 1, %s2843_s15  ;;  %s351_s22 = int_to_ptr.hbm [resolvable:$true] %s350_s22 }
  0x19   : > { %2405 = dma.hbm_to_vmem [thread:$0]  (!%p2978_p5), %s351_s22, 1024, %s353_s25, [#allocation8], %s3322_s12, %s3322_s12, %s3324_s20  }
  0x1a   : > { %s380_s28 = sshll.u32 %s3338_s3, 4  ;;  %p39_p6 = scmp.ge.s32.totalorder %s38_s21, 2  ;;  %s381_s28 = int_to_ptr.hbm [resolvable:$true] %s380_s28 }
  0x1b   : > { %2411 = dma.hbm_to_vmem [thread:$0]  (!%p2978_p5), %s381_s28, 2048, %s383_s11, [#allocation11], %s3322_s12, %s3322_s12, %s3324_s20  }
  0x1c   : > { %p175_p7 = scmp.ne.s32.totalorder %s2843_s15, %s2839_s14  ;;  %p176_p8 = scmp.eq.s32.totalorder %s2855_s18, 0 }
  0x1d   : > { %p181_p9 = scmp.ne.s32.totalorder %s2839_s14, %s2835_s13  ;;  %s3362_s21 = smov (%p39_p6, %s38_s21), 0 }
  0x1e   : > { %3340 = sst [smem:[#allocation27_spill]] %s3362_s21  ;;  %p177_p10 = por %p176_p8, %p175_p7 }
  0x1f   : > { %p3003_p11 = por %p182_p1, %p181_p9  ;;  %s165_s25 = ssub.s32 %s2851_s17, %s3362_s21 }
  0x20   : > { %p2427_p12 = scmp.lt.s32.totalorder %s2855_s18, 2  ;;  %p166_p13 = scmp.eq.s32.totalorder %s165_s25, 0 }
  0x21   : > { %s414_s26 = sand.u32 1, %s2855_s18   ;;  %s416_s27 = sand.u32 1, %s2843_s15  }
  0x22   : > { %s3013_s28 = scalar_select %p166_p13, %s2843_s15, %s168_s24  }
  0x23   : > { %s2364_s30 = smul.u32 384, %s416_s27  ;;  %p3015_p0 = pnand %p2427_p12, %p177_p10 }
  0x24   : > { %3342 = sst [smem:[#allocation28_spill]] %s3013_s28  ;;  %s2365_s13 = smul.u32 384, %s2851_s17 }
  0x25   : > { %s3344_s5 = sld [smem:[#allocation31_spill]]  ;;  %s418_s3 = scalar_lea.vmem [#allocation13], %s2364_s30 }
  0x26   : > { %s426_s21 = sshll.u32 %s418_s3, 4  ;;  %s3023_s25 = scalar_lea.sflag [#allocation14], %s414_s26  ;;  %s427_s21 = int_to_ptr.vmem [resolvable:$true] %s426_s21 }
  0x27   : > { %s2861_s24 = smov 128   ;;  %s2862_s28 = smov 8  }
  0x28   : > { %s1808_s15 = sshll.u32 %s416_s27, 6  ;;  %s336_s12 = sshll.u32 %s3311_s0, 4  ;;  %s337_s12 = int_to_ptr.hbm [resolvable:$true] %s336_s12 }
  0x29   : > { %s2863_s20 = smov [#allocation4]   ;;  %s365_s26 = sshll.u32 %s3313_s2, 4  ;;  %s366_s26 = int_to_ptr.hbm [resolvable:$true] %s365_s26 }
  0x2a   : > { %s338_s3 = sshll.u32 %s2863_s20, 4  ;;  %s398_s18 = sshll.u32 %s3315_s4, 4  ;;  %s339_s3 = int_to_ptr.vmem [resolvable:$true] %s338_s3  ;;  %s399_s18 = int_to_ptr.hbm [resolvable:$true] %s398_s18 }
  0x2b   : > { %s423_s1 = scalar_lea.hbm %s3344_s5, %s2365_s13  ;;  %s3345_s13 = smov 4  }
  0x2c   : > { %s424_s10 = sshll.u32 %s423_s1, 4  ;;  %s3346_s5 = smov 64   ;;  %s425_s10 = int_to_ptr.hbm [resolvable:$true] %s424_s10 }
  0x2d   : > { %2418 = dma.hbm_to_vmem [thread:$0]  (!%p3015_p0), %s425_s10, 6144, %s427_s21, %s3023_s25, %s2861_s24, %s2861_s24, %s2862_s28  }
  0x2e   : > { %2402 = dma.hbm_to_vmem [thread:$0]  (!%p2978_p5), %s337_s12, 128, %s339_s3, [#allocation5], %s3346_s5, %s3346_s5, %s3345_s13  }
  0x2f   : > { %s2864_s10 = smov [#allocation9]   ;;  %s2261_s28 = sshll.u32 %s2851_s17, 6 }
  0x30   : > { %s367_s21 = sshll.u32 %s2864_s10, 4  ;;  %s2865_s24 = smov [#allocation12]   ;;  %s368_s21 = int_to_ptr.vmem [resolvable:$true] %s367_s21 }
  0x31   : > { %2408 = dma.hbm_to_vmem [thread:$0]  (!%p2978_p5), %s366_s26, 16, %s368_s21, [#allocation8]  }
  0x32   : > { %s400_s20 = sshll.u32 %s2865_s24, 4  ;;  %s452_s12 = scalar_lea.hbm %s3318_s7, %s2261_s28  ;;  %s401_s20 = int_to_ptr.vmem [resolvable:$true] %s400_s20 }
  0x33   : > { %s453_s3 = sshll.u32 %s452_s12, 4  ;;  %s447_s10 = scalar_lea.vmem [#allocation15], %s1808_s15  ;;  %s454_s3 = int_to_ptr.hbm [resolvable:$true] %s453_s3 }
  0x34   : > { %2414 = dma.hbm_to_vmem [thread:$0]  (!%p2978_p5), %s399_s18, 2048, %s401_s20, [#allocation11], %s3346_s5, %s3346_s5, %s3345_s13  }
  0x35   : > { %s455_s27 = sshll.u32 %s447_s10, 4  ;;  %473 = sbr.rel (%p2967_p3) target bundleno = 1173 (0x495), region = 56  ;;  %s456_s27 = int_to_ptr.vmem [resolvable:$true] %s455_s27 }
  0x36   : > { %2421 = dma.hbm_to_vmem [thread:$0]  (!%p3015_p0), %s454_s3, 1024, %s456_s27, %s3023_s25, %s3346_s5, %s3346_s5, %s3345_s13  }
  0x3a   : > { %2810 = dma.done.wait (%p182_p1), [#allocation5], 128  }
  0x3b   : > { %2812 = vsyncadd (%p182_p1), [#allocation5], 4294967168 }
  0x3c   : > { %2814 = dma.done.wait (%p182_p1), [#allocation8], 1040  }
  0x3d   : > { %2816 = vsyncadd (%p182_p1), [#allocation8], 4294966256 }
  0x3e   : > { %2818 = dma.done.wait (%p182_p1), [#allocation11], 4096  }
  0x3f   : > { %2820 = vsyncadd (%p182_p1), [#allocation11], 4294963200  ;;  %s500_s5 = sand.u32 1, %s2959_s19   ;;  %s502_s15 = sand.u32 1, %s2839_s14  }
  0x40   : > { %s2366_s23 = smul.u32 384, %s502_s15  ;;  %s501_s29 = scalar_lea.sflag [#allocation14], %s500_s5 }
  0x42   : > { %s3075_s11 = scalar_lea.vmem [#allocation13], %s2366_s23 }
  0x43   : > { %2822 = dma.done.wait (%p3003_p11), %s501_s29, 7168  }
  0x44   : > { %2824 = vsyncadd (%p3003_p11), %s501_s29, 4294960128  ;;  %s1817_s25 = sshll.u32 %s502_s15, 6  ;;  %p562_p2 = scmp.lt.s32.totalorder %s2847_s16, 1 }
  0x45   : > { %s3095_s22 = scalar_lea.vmem [#allocation15], %s1817_s25  ;;  %p1819_p1 = scmp.ne.s32.totalorder %s2847_s16, 0 }
  0x46   : > { %s3083_s26 = scalar_select %p562_p2, %s2847_s16, 1 }
  0x47   : > { %574 = sbr.rel (%p1819_p1) target bundleno = 246 (0xf6), region = 88 }
  0x48   : > { %s1818_s13 = sshll.u32 %s3083_s26, 1  ;;  %s568_s18 = scalar_lea.vmem %s3319_s8, %s3083_s26 }
  0x49   : > { %s3093_s20 = scalar_lea.vmem %s3317_s6, %s1818_s13 }
  0x4c   : > { %v2270_v0 = vld [vmem:[#allocation7 + $0x38] sm:$0xff]  ;;  %v2269_v1 = vld [vmem:[#allocation7 + $0x30] sm:$0xff]  ;;  %v2268_v2 = vld [vmem:[#allocation7 + $0x28] sm:$0xff] }
  0x4d   : > { %651 = vmatpush.bf16.msra.mxu0 %v2270_v0  ;;  %v2267_v3 = vld [vmem:[#allocation7 + $0x20] sm:$0xff]  ;;  %v2266_v4 = vld [vmem:[#allocation7 + $0x18] sm:$0xff]  ;;  %v2265_v5 = vld [vmem:[#allocation7 + $0x10] sm:$0xff] }
  0x4e   : > { %v2264_v6 = vld [vmem:[#allocation7 + $0x8] sm:$0xff]  ;;  %v2263_v7 = vld [vmem:[#allocation7] sm:$0xff]  ;;  %v2262_v8 = vld [vmem:[#allocation4] sm:$0xff] }
  0x4f   : > { %v2501_v9 = vld [vmem:[#allocation9] ss:$0 sm:$0xff] }
  0x51   : > { %652 = vmatpush.bf16.msra.mxu0 %v2269_v1 }
  0x55   : > { %653 = vmatpush.bf16.msra.mxu0 %v2268_v2 }
  0x59   : > { %654 = vmatpush.bf16.msra.mxu0 %v2267_v3 }
  0x5d   : > { %655 = vmatpush.bf16.msra.mxu0 %v2266_v4 }
  0x61   : > { %656 = vmatpush.bf16.msra.mxu0 %v2265_v5 }
  0x65   : > { %657 = vmatpush.bf16.msra.mxu0 %v2264_v6 }
  0x69   : > { %658 = vmatpush.bf16.msra.mxu0 %v2263_v7 }
  0x6c   : > { %659 = vmatmul.bf16.vlgmr.msra.gmra.mxu0 %v2262_v8 }
  0xe9   : > { %v660_v10 = vpop.f32.mrf.mxu0 }
  0xea   : > { %v661_v11 = vadd.f32 %v2501_v9, %v660_v10 }
  0xec   : > { %665 = vst [vmem:[#allocation3 + $0x8] sm:$0xff] %v661_v11 }
  0xed   : > { %667 = vst [vmem:[#allocation2] sm:$0xff] %v661_v11 }
  0xf1   : > { %v662_v12 = vpop.f32.mrf.mxu0 }
  0xf2   : > { %v663_v13 = vadd.f32 %v2501_v9, %v662_v12 }
  0xf4   : > { %666 = vst [vmem:[#allocation3] sm:$0xff] %v663_v13 }
  0xf5   : > { %668 = vst [vmem:[#allocation2 + $0x8] sm:$0xff] %v663_v13 }
  0xf6 PF: > { %v2301_v14 = vld [vmem:[%s3075_s11 + $0x74] sm:$0xf]  ;;  %v1932_v15 = vld [vmem:[%s3075_s11 + $0x78] sm:$0xf0]  ;;  %v2299_v19 = vld [vmem:[%s3075_s11 + $0x64] sm:$0xf]  ;;  %v671_v55 = vlaneseq }
  0xf7   : > { %v2285_v16 = vld [vmem:[%s3075_s11 + $0x174] sm:$0xf]  ;;  %v1935_v17 = vor.u32 %v2301_v14, %v1932_v15  ;;  %v2002_v18 = vld [vmem:[%s3075_s11 + $0x178] sm:$0xf0]  ;;  %v1924_v20 = vld [vmem:[%s3075_s11 + $0x68] sm:$0xf0] }
  0xf8   : > { %v2005_v21 = vor.u32 %v2285_v16, %v2002_v18  ;;  %v2283_v22 = vld [vmem:[%s3075_s11 + $0x164] sm:$0xf]  ;;  %v1994_v23 = vld [vmem:[%s3075_s11 + $0x168] sm:$0xf0]  ;;  %v1930_v24 = vld [vmem:[%s3075_s11 + $0x70] sm:$0xf]  ;;  %v1927_v25 = vor.u32 %v2299_v19, %v1924_v20 }
  0xf9   : > { %840 = vmatpush.bf16.msra.mxu1 %v1935_v17  ;;  %v2302_v26 = vld [vmem:[%s3075_s11 + $0x74] sm:$0xf0]  ;;  %v1997_v27 = vor.u32 %v2283_v22, %v1994_v23  ;;  %v2297_v29 = vld [vmem:[%s3075_s11 + $0x54] sm:$0xf]  ;;  %v1916_v30 = vld [vmem:[%s3075_s11 + $0x58] sm:$0xf0] }
  0xfa   : > { %948 = vmatpush.bf16.msra.mxu3 %v2005_v21  ;;  %v1931_v28 = vor.u32 %v2302_v26, %v1930_v24  ;;  %v1922_v31 = vld [vmem:[%s3075_s11 + $0x60] sm:$0xf]  ;;  %v2281_v32 = vld [vmem:[%s3075_s11 + $0x154] sm:$0xf]  ;;  %v1986_v33 = vld [vmem:[%s3075_s11 + $0x158] sm:$0xf0]  ;;  %v1919_v36 = vor.u32 %v2297_v29, %v1916_v30 }
  0xfb   : > { %v2300_v34 = vld [vmem:[%s3075_s11 + $0x64] sm:$0xf0]  ;;  %v1914_v37 = vld [vmem:[%s3075_s11 + $0x50] sm:$0xf]  ;;  %v2298_v38 = vld [vmem:[%s3075_s11 + $0x54] sm:$0xf0]  ;;  %v1989_v39 = vor.u32 %v2281_v32, %v1986_v33 }
  0xfc   : > { %826 = vmatpush.bf16.msra.mxu0 %v1931_v28  ;;  %v1923_v35 = vor.u32 %v2300_v34, %v1922_v31  ;;  %v2295_v40 = vld [vmem:[%s3075_s11 + $0x44] sm:$0xf]  ;;  %v1908_v41 = vld [vmem:[%s3075_s11 + $0x48] sm:$0xf0]  ;;  %v1915_v44 = vor.u32 %v2298_v38, %v1914_v37  ;;  %v1906_v46 = vld [vmem:[%s3075_s11 + $0x40] sm:$0xf] }
  0xfd   : > { %841 = vmatpush.bf16.msra.mxu1 %v1927_v25  ;;  %v2279_v42 = vld [vmem:[%s3075_s11 + $0x144] sm:$0xf]  ;;  %v1978_v43 = vld [vmem:[%s3075_s11 + $0x148] sm:$0xf0]  ;;  %v1911_v45 = vor.u32 %v2295_v40, %v1908_v41  ;;  %v2296_v47 = vld [vmem:[%s3075_s11 + $0x44] sm:$0xf0] }
  0xfe   : > { %949 = vmatpush.bf16.msra.mxu3 %v1997_v27  ;;  %v1981_v48 = vor.u32 %v2279_v42, %v1978_v43  ;;  %v2293_v49 = vld [vmem:[%s3075_s11 + $0x34] sm:$0xf]  ;;  %v1900_v50 = vld [vmem:[%s3075_s11 + $0x38] sm:$0xf0]  ;;  %v2000_v53 = vld [vmem:[%s3075_s11 + $0x170] sm:$0xf]  ;;  %v1907_v56 = vor.u32 %v2296_v47, %v1906_v46 }
  0xff   : > { %v2277_v51 = vld [vmem:[%s3075_s11 + $0x134] sm:$0xf]  ;;  %v1970_v52 = vld [vmem:[%s3075_s11 + $0x138] sm:$0xf0]  ;;  %v2286_v54 = vld [vmem:[%s3075_s11 + $0x174] sm:$0xf0]  ;;  %v1903_v58 = vor.u32 %v2293_v49, %v1900_v50 }
 0x100   : > { %827 = vmatpush.bf16.msra.mxu0 %v1923_v35  ;;  %v2001_v57 = vor.u32 %v2286_v54, %v2000_v53  ;;  %v2291_v59 = vld [vmem:[%s3075_s11 + $0x24] sm:$0xf]  ;;  %v1898_v60 = vld [vmem:[%s3075_s11 + $0x30] sm:$0xf]  ;;  %v2294_v61 = vld [vmem:[%s3075_s11 + $0x34] sm:$0xf0]  ;;  %v1973_v62 = vor.u32 %v2277_v51, %v1970_v52 }
 0x101   : > { %842 = vmatpush.bf16.msra.mxu1 %v1919_v36  ;;  %v1892_v63 = vld [vmem:[%s3075_s11 + $0x28] sm:$0xf0]  ;;  %v2275_v0 = vld [vmem:[%s3075_s11 + $0x124] sm:$0xf]  ;;  %v1992_v1 = vld [vmem:[%s3075_s11 + $0x160] sm:$0xf]  ;;  %v1899_v5 = vor.u32 %v2294_v61, %v1898_v60 }
 0x102   : > { %950 = vmatpush.bf16.msra.mxu3 %v1989_v39  ;;  %934 = vmatpush.bf16.msra.mxu2 %v2001_v57  ;;  %v1962_v2 = vld [vmem:[%s3075_s11 + $0x128] sm:$0xf0]  ;;  %v2284_v3 = vld [vmem:[%s3075_s11 + $0x164] sm:$0xf0]  ;;  %v3137_v4 = vshrl.u32 %v671_v55, 7  ;;  %v1895_v10 = vor.u32 %v2291_v59, %v1892_v63  ;;  %v3153_v23 = vld [vmem:[#allocation2] sm:$0xff] }
 0x103   : > { %v2289_v6 = vld [vmem:[%s3075_s11 + $0x14] sm:$0xf]  ;;  %v1884_v7 = vld [vmem:[%s3075_s11 + $0x18] sm:$0xf0]  ;;  %v1890_v8 = vld [vmem:[%s3075_s11 + $0x20] sm:$0xf]  ;;  %v1993_v9 = vor.u32 %v2284_v3, %v1992_v1  ;;  %v1965_v14 = vor.u32 %v2275_v0, %v1962_v2 }
 0x104   : > { %828 = vmatpush.bf16.msra.mxu0 %v1915_v44  ;;  %v2292_v11 = vld [vmem:[%s3075_s11 + $0x24] sm:$0xf0]  ;;  %v1984_v12 = vld [vmem:[%s3075_s11 + $0x150] sm:$0xf]  ;;  %v2282_v13 = vld [vmem:[%s3075_s11 + $0x154] sm:$0xf0]  ;;  %v1887_v26 = vor.u32 %v2289_v6, %v1884_v7 }
 0x105   : > { %843 = vmatpush.bf16.msra.mxu1 %v1911_v45  ;;  %v2273_v15 = vld [vmem:[%s3075_s11 + $0x114] sm:$0xf]  ;;  %v1954_v16 = vld [vmem:[%s3075_s11 + $0x118] sm:$0xf0]  ;;  %v1985_v17 = vor.u32 %v2282_v13, %v1984_v12  ;;  %v3148_v18 = vadd.s32 8, %v3137_v4  ;;  %v1891_v20 = vor.u32 %v2292_v11, %v1890_v8  ;;  %v716_v29 = vrot.slane %v3153_v23, 6 }
 0x106   : > { %951 = vmatpush.bf16.msra.mxu3 %v1981_v48  ;;  %935 = vmatpush.bf16.msra.mxu2 %v1993_v9  ;;  %v1882_v19 = vld [vmem:[%s3075_s11 + $0x10] sm:$0xf]  ;;  %v2287_v21 = vld [vmem:[%s3075_s11 + $0x4] sm:$0xf]  ;;  %v1876_v22 = vld [vmem:[%s3075_s11 + $0x8] sm:$0xf0]  ;;  %v1957_v27 = vor.u32 %v2273_v15, %v1954_v16 }
 0x107   : > { %v3155_v24 = vld [vmem:[#allocation2 + $0x8] sm:$0xff]  ;;  %v2290_v28 = vld [vmem:[%s3075_s11 + $0x14] sm:$0xf0]  ;;  %v2280_v31 = vld [vmem:[%s3075_s11 + $0x144] sm:$0xf0]  ;;  %v678_v33 = vand.u32 7, %v3137_v4  ;;  %v1879_v42 = vor.u32 %v2287_v21, %v1876_v22 }
 0x108   : > { %829 = vmatpush.bf16.msra.mxu0 %v1907_v56  ;;  %v1976_v25 = vld [vmem:[%s3075_s11 + $0x140] sm:$0xf]  ;;  %v717_v30 = vrot.slane %v3155_v24, 6  ;;  %v2271_v32 = vld [vmem:[%s3075_s11 + $0x104] sm:$0xf]  ;;  %v685_v34 = vand.u32 7, %v3148_v18  ;;  %v1883_v39 = vor.u32 %v2290_v28, %v1882_v19  ;;  %v698_v61 = vpack.c.bf16 %v3155_v24, %v3153_v23 }
 0x109   : > { %844 = vmatpush.bf16.msra.mxu1 %v1903_v58  ;;  %vm718_vm0 = vcmp.lt.s32.totalorder %v3137_v4, 2  ;;  %v1977_v35 = vor.u32 %v2280_v31, %v1976_v25  ;;  %v1946_v36 = vld [vmem:[%s3075_s11 + $0x108] sm:$0xf0]  ;;  %v2317_v37 = vld [vmem:[%s3075_s11 + $0xf4] sm:$0xf]  ;;  %vm3177_vm1 = vcmp.ge.s32.totalorder %v678_v33, 2 }
 0x10a   : > { %952 = vmatpush.bf16.msra.mxu3 %v1973_v62  ;;  %936 = vmatpush.bf16.msra.mxu2 %v1985_v17  ;;  %v2082_v38 = vld [vmem:[%s3075_s11 + $0xf8] sm:$0xf0]  ;;  %v1968_v40 = vld [vmem:[%s3075_s11 + $0x130] sm:$0xf]  ;;  %v2278_v41 = vld [vmem:[%s3075_s11 + $0x134] sm:$0xf0]  ;;  %v719_v45 = vsel %vm718_vm0, %v716_v29, %v717_v30  ;;  %v720_v46 = vsel %vm718_vm0, %v717_v30, %v716_v29  ;;  %v1949_v47 = vor.u32 %v2271_v32, %v1946_v36 }
 0x10b   : > { %v1874_v43 = vld [vmem:[%s3075_s11] sm:$0xf]  ;;  %v2288_v44 = vld [vmem:[%s3075_s11 + $0x4] sm:$0xf0]  ;;  %v2085_v48 = vor.u32 %v2317_v37, %v2082_v38  ;;  %v2080_v49 = vld [vmem:[%s3075_s11 + $0xf0] sm:$0xf]  ;;  %v1969_v56 = vor.u32 %v2278_v41, %v1968_v40  ;;  %v1937_v58 = vpack.c.bf16 %v719_v45, %v720_v46 }
 0x10c   : > { %830 = vmatpush.bf16.msra.mxu0 %v1899_v5  ;;  %v2318_v50 = vld [vmem:[%s3075_s11 + $0xf4] sm:$0xf0]  ;;  %vm3183_vm2 = vcmp.ge.s32.totalorder %v685_v34, 2  ;;  %v2315_v53 = vld [vmem:[%s3075_s11 + $0xe4] sm:$0xf]  ;;  %v1875_v57 = vor.u32 %v2288_v44, %v1874_v43  ;;  %v962_v45 = vrot.slane %v3153_v23, 7 }
 0x10d   : > { %845 = vmatpush.bf16.msra.mxu1 %v1895_v10  ;;  %v2074_v54 = vld [vmem:[%s3075_s11 + $0xe8] sm:$0xf0]  ;;  %v1960_v59 = vld [vmem:[%s3075_s11 + $0x120] sm:$0xf]  ;;  %v2276_v60 = vld [vmem:[%s3075_s11 + $0x124] sm:$0xf0]  ;;  %v2081_v62 = vor.u32 %v2318_v50, %v2080_v49 }
 0x10e   : > { %953 = vmatpush.bf16.msra.mxu3 %v1965_v14  ;;  %937 = vmatpush.bf16.msra.mxu2 %v1977_v35  ;;  %vm1936_vm3 = vmpackc.low %vm3183_vm2, %vm3177_vm1  ;;  %v2077_v63 = vor.u32 %v2315_v53, %v2074_v54  ;;  %v2072_v0 = vld [vmem:[%s3075_s11 + $0xe0] sm:$0xf]  ;;  %v2316_v1 = vld [vmem:[%s3075_s11 + $0xe4] sm:$0xf0]  ;;  %v1961_v5 = vor.u32 %v2276_v60, %v1960_v59  ;;  %v963_v46 = vrot.slane %v3155_v24, 7  ;;  %vm964_vm4 = vcmp.lt.s32.totalorder %v3137_v4, 1 }
 0x10f   : > { %v2313_v2 = vld [vmem:[%s3075_s11 + $0xd4] sm:$0xf]  ;;  %v2066_v3 = vld [vmem:[%s3075_s11 + $0xd8] sm:$0xf0]  ;;  %v1952_v6 = vld [vmem:[%s3075_s11 + $0x110] sm:$0xf]  ;;  %v2073_v8 = vor.u32 %v2316_v1, %v2072_v0 }
 0x110   : > { %831 = vmatpush.bf16.msra.mxu0 %v1891_v20  ;;  %v2274_v7 = vld [vmem:[%s3075_s11 + $0x114] sm:$0xf0]  ;;  %v2069_v9 = vor.u32 %v2313_v2, %v2066_v3  ;;  %v2064_v10 = vld [vmem:[%s3075_s11 + $0xd0] sm:$0xf]  ;;  %v2311_v12 = vld [vmem:[%s3075_s11 + $0xc4] sm:$0xf]  ;;  %v965_v51 = vsel %vm964_vm4, %v962_v45, %v963_v46  ;;  %v966_v52 = vsel %vm964_vm4, %v963_v46, %v962_v45 }
 0x111   : > { %846 = vmatpush.bf16.msra.mxu1 %v1887_v26  ;;  %v2314_v11 = vld [vmem:[%s3075_s11 + $0xd4] sm:$0xf0]  ;;  %v2058_v13 = vld [vmem:[%s3075_s11 + $0xc8] sm:$0xf0]  ;;  %v1953_v14 = vor.u32 %v2274_v7, %v1952_v6  ;;  %v1944_v15 = vld [vmem:[%s3075_s11 + $0x100] sm:$0xf] }
 0x112   : > { %954 = vmatpush.bf16.msra.mxu3 %v1957_v27  ;;  %938 = vmatpush.bf16.msra.mxu2 %v1969_v56  ;;  %v2272_v16 = vld [vmem:[%s3075_s11 + $0x104] sm:$0xf0]  ;;  %v2065_v17 = vor.u32 %v2314_v11, %v2064_v10  ;;  %v2061_v19 = vor.u32 %v2311_v12, %v2058_v13  ;;  %v2056_v20 = vld [vmem:[%s3075_s11 + $0xc0] sm:$0xf]  ;;  %v2309_v22 = vld [vmem:[%s3075_s11 + $0xb4] sm:$0xf]  ;;  %v2087_v56 = vpack.c.bf16 %v965_v51, %v966_v52 }
 0x113   : > { %v2312_v21 = vld [vmem:[%s3075_s11 + $0xc4] sm:$0xf0]  ;;  %v2050_v25 = vld [vmem:[%s3075_s11 + $0xb8] sm:$0xf0]  ;;  %v1945_v26 = vor.u32 %v2272_v16, %v1944_v15  ;;  %v2048_v29 = vld [vmem:[%s3075_s11 + $0xb0] sm:$0xf] }
 0x114   : > { %832 = vmatpush.bf16.msra.mxu0 %v1883_v39  ;;  %v2057_v27 = vor.u32 %v2312_v21, %v2056_v20  ;;  %v2053_v28 = vor.u32 %v2309_v22, %v2050_v25  ;;  %v2310_v30 = vld [vmem:[%s3075_s11 + $0xb4] sm:$0xf0]  ;;  %v2307_v31 = vld [vmem:[%s3075_s11 + $0xa4] sm:$0xf]  ;;  %v2042_v32 = vld [vmem:[%s3075_s11 + $0xa8] sm:$0xf0] }
 0x115   : > { %847 = vmatpush.bf16.msra.mxu1 %v1879_v42  ;;  %v2049_v35 = vor.u32 %v2310_v30, %v2048_v29  ;;  %v2045_v36 = vor.u32 %v2307_v31, %v2042_v32  ;;  %v2040_v37 = vld [vmem:[%s3075_s11 + $0xa0] sm:$0xf]  ;;  %v2308_v38 = vld [vmem:[%s3075_s11 + $0xa4] sm:$0xf0]  ;;  %v2305_v39 = vld [vmem:[%s3075_s11 + $0x94] sm:$0xf] }
 0x116   : > { %955 = vmatpush.bf16.msra.mxu3 %v1949_v47  ;;  %939 = vmatpush.bf16.msra.mxu2 %v1961_v5  ;;  %v2034_v40 = vld [vmem:[%s3075_s11 + $0x98] sm:$0xf0]  ;;  %v2041_v41 = vor.u32 %v2308_v38, %v2040_v37  ;;  %v2032_v43 = vld [vmem:[%s3075_s11 + $0x90] sm:$0xf]  ;;  %v2306_v44 = vld [vmem:[%s3075_s11 + $0x94] sm:$0xf0] }
 0x117   : > { %v2037_v42 = vor.u32 %v2305_v39, %v2034_v40  ;;  %v2303_v47 = vld [vmem:[%s3075_s11 + $0x84] sm:$0xf]  ;;  %v2033_v49 = vor.u32 %v2306_v44, %v2032_v43  ;;  %v2024_v53 = vld [vmem:[%s3075_s11 + $0x80] sm:$0xf]  ;;  %v2304_v54 = vld [vmem:[%s3075_s11 + $0x84] sm:$0xf0] }
 0x118   : > { %833 = vmatpush.bf16.msra.mxu0 %v1875_v57  ;;  %1941 = vmatmul.msk.bf16.vlgmr.msra.gmra.mxu1 %vm1936_vm3, %v1937_v58  ;;  %vm967_vm5 = vcmp.ge.s32.totalorder %v678_v33, 1  ;;  %vm968_vm6 = vcmp.ge.s32.totalorder %v685_v34, 1  ;;  %v2025_v57 = vor.u32 %v2304_v54, %v2024_v53  ;;  %v2325_v4 = vld [vmem:[%s3095_s22 + $0x30] sm:$0xff]  ;;  %v2324_v33 = vld [vmem:[%s3095_s22 + $0x28] sm:$0xff]  ;;  %v2323_v34 = vld [vmem:[%s3095_s22 + $0x20] sm:$0xff]  ;;  %p2254_p3 = scmp.ne.s32.totalorder %s2847_s16, 1 }
 0x119   : > { %1087 = vmatpush.bf16.msrb.mxu1 %v2085_v48  ;;  %956 = vmatmul.bf16.vlgmr.msra.gmra.mxu3 %v698_v61  ;;  %v2026_v48 = vld [vmem:[%s3075_s11 + $0x88] sm:$0xf0]  ;;  %vm2086_vm7 = vmpackc.low %vm968_vm6, %vm967_vm5  ;;  %v2321_v5 = vld [vmem:[%s3095_s22 + $0x10] sm:$0xff] }
 0x11a   : > { %940 = vmatpush.bf16.msra.mxu2 %v1953_v14  ;;  %v2029_v50 = vor.u32 %v2303_v47, %v2026_v48  ;;  %v2319_v13 = vld [vmem:[%s3095_s22] sm:$0xff]  ;;  %v2342_v21 = vld [vmem:[#allocation10 + $0x78] sm:$0xff]  ;;  %v2333_v22 = vld [vmem:[#allocation10 + $0x30] sm:$0xff] }
 0x11b   : > { %1938 = vmatmul.msk.bf16.vlgmr.msra.gmra.mxu0 %vm1936_vm3, %v1937_v58  ;;  %v2326_v58 = vld [vmem:[%s3095_s22 + $0x38] sm:$0xff]  ;;  %v2341_v25 = vld [vmem:[#allocation10 + $0x70] sm:$0xff]  ;;  %v2339_v37 = vld [vmem:[#allocation10 + $0x60] sm:$0xff] }
 0x11c   : > { %1073 = vmatpush.bf16.msrb.mxu0 %v2081_v62  ;;  %v2322_v62 = vld [vmem:[%s3095_s22 + $0x18] sm:$0xff]  ;;  %v2329_v48 = vld [vmem:[#allocation10 + $0x10] sm:$0xff] }
 0x11d   : > { %1088 = vmatpush.bf16.msrb.mxu1 %v2077_v63 }
 0x11e   : > { %941 = vmatpush.bf16.msra.mxu2 %v1945_v26 }
 0x120   : > { %1074 = vmatpush.bf16.msrb.mxu0 %v2073_v8 }
 0x121   : > { %1089 = vmatpush.bf16.msrb.mxu1 %v2069_v9  ;;  %942 = vmatmul.bf16.vlgmr.msra.gmra.mxu2 %v698_v61  ;;  %v3249_v61 = vld [vmem:[%s3093_s20] sm:$0x3]  ;;  %v2320_v9 = vld [vmem:[%s3095_s22 + $0x8] sm:$0xff] }
 0x122   : > { %1224 = vmatpush.bf16.msrb.mxu2 %v2326_v58  ;;  %v1108_v0 = vperm.slane %v3249_v61, 1  ;;  %v1107_v53 = vperm.slane %v3249_v61, 0 }
 0x124   : > { %1075 = vmatpush.bf16.msrb.mxu0 %v2065_v17 }
 0x125   : > { %1090 = vmatpush.bf16.msrb.mxu1 %v2061_v19  ;;  %v2334_v19 = vld [vmem:[#allocation10 + $0x38] sm:$0xff] }
 0x126   : > { %1225 = vmatpush.bf16.msrb.mxu2 %v2325_v4  ;;  %1330 = vmatpush.bf16.msrb.mxu3 %v2334_v19  ;;  %v1239_v19 = vld [vmem:[#allocation3] sm:$0xff] }
 0x128   : > { %1076 = vmatpush.bf16.msrb.mxu0 %v2057_v27  ;;  %v2332_v27 = vld [vmem:[#allocation10 + $0x28] sm:$0xff] }
 0x129   : > { %1091 = vmatpush.bf16.msrb.mxu1 %v2053_v28  ;;  %v2340_v28 = vld [vmem:[#allocation10 + $0x68] sm:$0xff] }
 0x12a   : > { %1226 = vmatpush.bf16.msrb.mxu2 %v2324_v33  ;;  %1331 = vmatpush.bf16.msrb.mxu3 %v2333_v22 }
 0x12c   : > { %1077 = vmatpush.bf16.msrb.mxu0 %v2049_v35 }
 0x12d   : > { %1092 = vmatpush.bf16.msrb.mxu1 %v2045_v36  ;;  %v2331_v36 = vld [vmem:[#allocation10 + $0x20] sm:$0xff] }
 0x12e   : > { %1227 = vmatpush.bf16.msrb.mxu2 %v2323_v34  ;;  %1332 = vmatpush.bf16.msrb.mxu3 %v2332_v27 }
 0x130   : > { %1078 = vmatpush.bf16.msrb.mxu0 %v2041_v41  ;;  %v2330_v41 = vld [vmem:[#allocation10 + $0x18] sm:$0xff] }
 0x131   : > { %1093 = vmatpush.bf16.msrb.mxu1 %v2037_v42 }
 0x132   : > { %1228 = vmatpush.bf16.msrb.mxu2 %v2322_v62  ;;  %1333 = vmatpush.bf16.msrb.mxu3 %v2331_v36 }
 0x134   : > { %1079 = vmatpush.bf16.msrb.mxu0 %v2033_v49 }
 0x135   : > { %1094 = vmatpush.bf16.msrb.mxu1 %v2029_v50 }
 0x136   : > { %1229 = vmatpush.bf16.msrb.mxu2 %v2321_v5  ;;  %1334 = vmatpush.bf16.msrb.mxu3 %v2330_v41  ;;  %v2338_v5 = vld [vmem:[#allocation10 + $0x58] sm:$0xff]  ;;  %v2356_v41 = vld [vmem:[#allocation12 + $0x68] sm:$0xff] }
 0x138   : > { %2091 = vmatmul.msk.bf16.vlgmr.msrb.gmra.mxu1 %vm2086_vm7, %v2087_v56  ;;  %1080 = vmatpush.bf16.msrb.mxu0 %v2025_v57 }
 0x13a   : > { %1230 = vmatpush.bf16.msrb.mxu2 %v2320_v9  ;;  %1335 = vmatpush.bf16.msrb.mxu3 %v2329_v48  ;;  %v2335_v9 = vld [vmem:[#allocation10 + $0x40] sm:$0xff] }
 0x13b   : > { %2088 = vmatmul.msk.bf16.vlgmr.msrb.gmra.mxu0 %vm2086_vm7, %v2087_v56 }
 0x13c   : > { %1391 = vmatpush.bf16.msra.mxu0 %v2342_v21 }
 0x13e   : > { %1231 = vmatpush.bf16.msrb.mxu2 %v2319_v13 }
 0x140   : > { %1392 = vmatpush.bf16.msra.mxu0 %v2341_v25 }
 0x144   : > { %1393 = vmatpush.bf16.msra.mxu0 %v2340_v28  ;;  %v2866_v28 = vmov -1e+30  }
 0x148   : > { %1394 = vmatpush.bf16.msra.mxu0 %v2339_v37  ;;  %v2358_v37 = vld [vmem:[#allocation12 + $0x78] sm:$0xff] }
 0x149   : > { %1565 = vmatpush.bf16.msra.mxu2 %v2358_v37 }
 0x14c   : > { %1395 = vmatpush.bf16.msra.mxu0 %v2338_v5 }
 0x195   : > { %v849_v59 = vpop.f32.mrf.mxu1 }
 0x198   : > { %v835_v2 = vpop.f32.mrf.mxu0 }
 0x19c   : > { %v957_v60 = vpop.f32.mrf.mxu3 }
 0x19d   : > { %v851_v18 = vpop.f32.mrf.mxu1  ;;  %v958_v63 = vadd.f32 %v957_v60, %v849_v59 }
 0x1a0   : > { %v837_v14 = vpop.f32.mrf.mxu0 }
 0x1a4   : > { %v959_v7 = vpop.f32.mrf.mxu3  ;;  %v943_v26 = vpop.f32.mrf.mxu2 }
 0x1a5   : > { %v960_v10 = vadd.f32 %v959_v7, %v851_v18  ;;  %v944_v43 = vadd.f32 %v943_v26, %v835_v2  ;;  %v2337_v7 = vld [vmem:[#allocation10 + $0x50] sm:$0xff]  ;;  %v1279_v26 = vand.u32 127, %v671_v55  ;;  %v2348_v55 = vld [vmem:[#allocation12 + $0x28] sm:$0xff] }
 0x1a6   : > { %1396 = vmatpush.bf16.msra.mxu0 %v2337_v7 }
 0x1a7   : > { %vm1280_vm0 = vcmp.lt.s32.totalorder %v1279_v26, 16 }
 0x1ac   : > { %v945_v40 = vpop.f32.mrf.mxu2 }
 0x1ad   : > { %v946_v44 = vadd.f32 %v945_v40, %v837_v14  ;;  %v2349_v40 = vld [vmem:[#allocation12 + $0x30] sm:$0xff] }
 0x1b5   : > { %v1096_v1 = vpop.f32.mrf.mxu1 }
 0x1b6   : > { %v1102_v3 = vadd.f32 %v1096_v1, %v958_v63 }
 0x1b8   : > { %v1112_v6 = vadd.f32 %v1108_v0, %v1102_v3  ;;  %v1082_v30 = vpop.f32.mrf.mxu0  ;;  %v2328_v3 = vld [vmem:[#allocation10 + $0x8] sm:$0xff] }
 0x1b9   : > { %v1101_v52 = vadd.f32 %v1082_v30, %v944_v43  ;;  %1336 = vmatpush.bf16.msrb.mxu3 %v2328_v3 }
 0x1ba   : > { %v2092_v8 = vmul.f32 -1.442695, %v1112_v6  ;;  %v2327_v6 = vld [vmem:[#allocation10] sm:$0xff] }
 0x1bb   : > { %v1111_v60 = vadd.f32 %v1107_v53, %v1101_v52  ;;  %v2347_v52 = vld [vmem:[#allocation12 + $0x20] sm:$0xff] }
 0x1bc   : > { %2503 = vpow2.f32 %v2092_v8  ;;  %v2336_v8 = vld [vmem:[#allocation10 + $0x48] sm:$0xff] }
 0x1bd   : > { %v1098_v11 = vpop.f32.mrf.mxu1  ;;  %1337 = vmatpush.bf16.msrb.mxu3 %v2327_v6  ;;  %1397 = vmatpush.bf16.msra.mxu0 %v2336_v8 }
 0x1be   : > { %v1104_v12 = vadd.f32 %v1098_v11, %v960_v10  ;;  %v2502_v10 = vld [vmem:[%s568_s18] ss:$0 sm:$0xff] }
 0x1c0   : > { %v1114_v15 = vadd.f32 %v1108_v0, %v1104_v12  ;;  %v1084_v46 = vpop.f32.mrf.mxu0  ;;  %v1238_v12 = vld [vmem:[#allocation3 + $0x8] sm:$0xff] }
 0x1c1   : > { %v1103_v54 = vadd.f32 %v1084_v46, %v946_v44  ;;  %1398 = vmatpush.bf16.msra.mxu0 %v2335_v9 }
 0x1c2   : > { %v2504_v16 = vpop.eup %2503  ;;  %v2093_v17 = vmul.f32 -1.442695, %v1114_v15 }
 0x1c3   : > { %v1121_v20 = vadd.f32 1.0, %v2504_v16  ;;  %v1113_v62 = vadd.f32 %v1107_v53, %v1103_v54  ;;  %v2353_v53 = vld [vmem:[#allocation12 + $0x50] sm:$0xff]  ;;  %v2346_v54 = vld [vmem:[#allocation12 + $0x18] sm:$0xff] }
 0x1c4   : > { %2505 = vpow2.f32 %v2093_v17 }
 0x1c5   : > { %2507 = vrcp.f32 %v1121_v20  ;;  %v1134_v49 = vand.u32 2147483648, %v1121_v20  ;;  %vm1128_vm9 = vweird.f32 %v1121_v20  ;;  %v1132_v50 = vand.u32 2147483647, %v1121_v20 }
 0x1c7   : > { %v1135_v4 = vor.u32 1.1754944e-38, %v1134_v49  ;;  %vm1133_vm12 = vcmp.eq.f32.partialorder %v1132_v50, 8.507059e+37 }
 0x1ca   : > { %v2506_v29 = vpop.eup %2505 }
 0x1cb   : > { %v2508_v31 = vpop.eup %2507  ;;  %v1122_v32 = vadd.f32 1.0, %v2506_v29  ;;  %v1281_v29 = vsel %vm1280_vm0, 0.0, %v2866_v28 }
 0x1cc   : > { %v1124_v35 = vmul.f32 %v2508_v31, %v1121_v20  ;;  %vm1129_vm8 = vweird.f32 %v2508_v31 }
 0x1cd   : > { %2509 = vrcp.f32 %v1122_v32  ;;  %vm1130_vm10 = vmor %vm1128_vm9, %vm1129_vm8  ;;  %v1149_v56 = vand.u32 2147483648, %v1122_v32  ;;  %v1147_v59 = vand.u32 2147483647, %v1122_v32  ;;  %vm1143_vm13 = vweird.f32 %v1122_v32 }
 0x1ce   : > { %v1125_v38 = vsub.f32 1.0, %v1124_v35 }
 0x1cf   : > { %v1150_v34 = vor.u32 1.1754944e-38, %v1149_v56  ;;  %vm1148_vm15 = vcmp.eq.f32.partialorder %v1147_v59, 8.507059e+37  ;;  %v2352_v56 = vld [vmem:[#allocation12 + $0x48] sm:$0xff] }
 0x1d0   : > { %v1126_v39 = vmul.f32 %v2508_v31, %v1125_v38  ;;  %v2350_v38 = vld [vmem:[#allocation12 + $0x38] sm:$0xff]  ;;  %v2344_v59 = vld [vmem:[#allocation12 + $0x8] sm:$0xff] }
 0x1d1   : > { %1504 = vmatpush.bf16.msra.mxu1 %v2350_v38 }
 0x1d2   : > { %v1127_v45 = vadd.f32 %v2508_v31, %v1126_v39  ;;  %v2357_v39 = vld [vmem:[#allocation12 + $0x70] sm:$0xff] }
 0x1d3   : > { %v2510_v42 = vpop.eup %2509  ;;  %1566 = vmatpush.bf16.msra.mxu2 %v2357_v39 }
 0x1d4   : > { %v1139_v47 = vmul.f32 %v2510_v42, %v1122_v32  ;;  %v1131_v57 = vsel %vm1130_vm10, %v2508_v31, %v1127_v45  ;;  %vm1144_vm11 = vweird.f32 %v2510_v42  ;;  %v2354_v45 = vld [vmem:[#allocation12 + $0x58] sm:$0xff] }
 0x1d5   : > { %v1136_v18 = vsel %vm1133_vm12, %v1135_v4, %v1131_v57  ;;  %vm1145_vm14 = vmor %vm1143_vm13, %vm1144_vm11  ;;  %1505 = vmatpush.bf16.msra.mxu1 %v2349_v40  ;;  %v2345_v57 = vld [vmem:[#allocation12 + $0x10] sm:$0xff]  ;;  %v2343_v4 = vld [vmem:[#allocation12] sm:$0xff] }
 0x1d6   : > { %v1140_v51 = vsub.f32 1.0, %v1139_v47  ;;  %v3257_v0 = vmul.f32 %v1136_v18, %v1111_v60 }
 0x1d7   : > { %1567 = vmatpush.bf16.msra.mxu2 %v2356_v41 }
 0x1d8   : > { %v1141_v58 = vmul.f32 %v2510_v42, %v1140_v51 }
 0x1d9   : > { %1506 = vmatpush.bf16.msra.mxu1 %v2348_v55 }
 0x1da   : > { %v1142_v33 = vadd.f32 %v2510_v42, %v1141_v58  ;;  %v2351_v58 = vld [vmem:[#allocation12 + $0x40] sm:$0xff] }
 0x1dc   : > { %v1146_v63 = vsel %vm1145_vm14, %v2510_v42, %v1142_v33  ;;  %v2355_v42 = vld [vmem:[#allocation12 + $0x60] sm:$0xff] }
 0x1dd   : > { %v1151_v61 = vsel %vm1148_vm15, %v1150_v34, %v1146_v63  ;;  %1568 = vmatpush.bf16.msra.mxu2 %v2355_v42  ;;  %1507 = vmatpush.bf16.msra.mxu1 %v2347_v52 }
 0x1de   : > { %v3259_v1 = vmul.f32 %v1151_v61, %v1113_v62 }
 0x1e0   : > { %v1155_v2 = vpack.c.bf16 %v3259_v1, %v3257_v0 }
 0x1e1   : > { %1569 = vmatpush.bf16.msra.mxu2 %v2354_v45  ;;  %1508 = vmatpush.bf16.msra.mxu1 %v2346_v54 }
 0x1e2   : > { %1232 = vmatmul.bf16.vlgmr.msrb.gmra.mxu2 %v1155_v2 }
 0x1e5   : > { %1570 = vmatpush.bf16.msra.mxu2 %v2353_v53  ;;  %1509 = vmatpush.bf16.msra.mxu1 %v2345_v57 }
 0x1e9   : > { %1571 = vmatpush.bf16.msra.mxu2 %v2352_v56  ;;  %1510 = vmatpush.bf16.msra.mxu1 %v2344_v59 }
 0x1ed   : > { %1572 = vmatpush.bf16.msra.mxu2 %v2351_v58  ;;  %1511 = vmatpush.bf16.msra.mxu1 %v2343_v4 }
 0x265   : > { %v1233_v11 = vpop.f32.mrf.mxu2 }
 0x266   : > { %v1234_v13 = vadd.f32 %v2502_v10, %v1233_v11 }
 0x268   : > { %v1240_v14 = vadd.f32 %v1238_v12, %v1234_v13 }
 0x26a   : > { %v1242_v15 = vmul.f32 0.70710677, %v1240_v14 }
 0x26c   : > { %v1244_v16 = vpack.c.bf16 %v1242_v15, %v1242_v15 }
 0x26d   : > { %v1235_v17 = vpop.f32.mrf.mxu2 }
 0x26e   : > { %v1236_v20 = vadd.f32 %v2502_v10, %v1235_v17  ;;  %1338 = vmatmul.bf16.vlgmr.msrb.gmra.mxu3 %v1244_v16 }
 0x270   : > { %v1241_v21 = vadd.f32 %v1239_v19, %v1236_v20 }
 0x272   : > { %v1243_v22 = vmul.f32 0.70710677, %v1241_v21 }
 0x274   : > { %v1245_v25 = vpack.c.bf16 %v1243_v22, %v1243_v22 }
 0x276   : > { %1399 = vmatmul.bf16.vlgmr.msra.gmra.mxu0 %v1245_v25 }
 0x2f1   : > { %v1339_v27 = vpop.f32.mrf.mxu3 }
 0x2f2   : > { %v1340_v36 = vadd.f32 %v1339_v27, %v1281_v29 }
 0x2f3   : > { %v1400_v30 = vpop.f32.mrf.mxu0 }
 0x2f4   : > { %v1401_v31 = vadd.f32 %v1400_v30, %v1281_v29 }
 0x2f6   : > { %1406 = vmax.xlane.f32.xlu0 %v1401_v31 }
 0x2f9   : > { %v1341_v32 = vpop.f32.mrf.mxu3 }
 0x2fb   : > { %v1402_v35 = vpop.f32.mrf.mxu0 }
 0x2fe   : > { %1404 = vmax.xlane.f32.xlu0 %v1340_v36 }
 0x369   : > { %v1407_v43 = vpop.xlane.xlu0 %1406 }
 0x36a   : > { %v1409_v44 = vsub.f32 %v1401_v31, %v1407_v43 }
 0x36c   : > { %v1412_v46 = vmul.f32 1.442695, %v1409_v44 }
 0x36e   : > { %2511 = vpow2.f32 %v1412_v46 }
 0x371   : > { %v1405_v47 = vpop.xlane.xlu0 %1404 }
 0x372   : > { %v1408_v48 = vsub.f32 %v1340_v36, %v1405_v47 }
 0x374   : > { %v2512_v49 = vpop.eup %2511  ;;  %v1410_v50 = vmul.f32 1.442695, %v1408_v48 }
 0x375   : > { %1416 = vadd.xlane.f32.xlu1 %v2512_v49 }
 0x376   : > { %2513 = vpow2.f32 %v1410_v50 }
 0x37c   : > { %v2514_v51 = vpop.eup %2513 }
 0x37d   : > { %1414 = vadd.xlane.f32.xlu1 %v2514_v51 }
 0x3e8   : > { %v1417_v33 = vpop.xlane.xlu1 %1416 }
 0x3e9   : > { %2515 = vrcp.f32 %v1417_v33 }
 0x3ef   : > { %v2516_v18 = vpop.eup %2515 }
 0x3f0   : > { %v1421_v34 = vmul.f32 %v2516_v18, %v2512_v49  ;;  %v1415_v60 = vpop.xlane.xlu1 %1414 }
 0x3f1   : > { %2517 = vrcp.f32 %v1415_v60 }
 0x3f2   : > { %v1423_v62 = vpack.c.bf16 %v1421_v34, %v1421_v34 }
 0x3f4   : > { %1573 = vmatmul.bf16.vlgmr.msra.gmra.mxu2 %v1423_v62 }
 0x3f7   : > { %v2518_v63 = vpop.eup %2517 }
 0x3f8   : > { %v1420_v61 = vmul.f32 %v2518_v63, %v2514_v51 }
 0x3fa   : > { %v1422_v2 = vpack.c.bf16 %v1420_v61, %v1420_v61 }
 0x3fc   : > { %1512 = vmatmul.bf16.vlgmr.msra.gmra.mxu1 %v1422_v2 }
 0x477   : > { %v1574_v3 = vpop.f32.mrf.mxu2 }
 0x478   : > { %v1579_v5 = vadd.f32 %v1574_v3, %v3259_v1 }
 0x479   : > { %v1513_v6 = vpop.f32.mrf.mxu1 }
 0x47a   : > { %v1581_v7 = vmul.f32 0.70710677, %v1579_v5  ;;  %v1578_v8 = vadd.f32 %v1513_v6, %v3257_v0 }
 0x47c   : > { %v1583_v9 = vadd.f32 %v1581_v7, %v3155_v24  ;;  %v1580_v10 = vmul.f32 0.70710677, %v1578_v8 }
 0x47e   : > { %v1585_v11 = vmul.f32 0.70710677, %v1583_v9  ;;  %v1582_v12 = vadd.f32 %v1580_v10, %v3153_v23  ;;  %1591 = sbr.rel (%p2254_p3) target bundleno = 1158 (0x486), region = 92 }
 0x47f   : > { %v1576_v13 = vpop.f32.mrf.mxu2 }
 0x480   : > { %1587 = vst [vmem:[#allocation2 + $0x8] sm:$0xff] %v1585_v11  ;;  %v1584_v14 = vmul.f32 0.70710677, %v1582_v12 }
 0x481   : > { %v1515_v15 = vpop.f32.mrf.mxu1 }
 0x482   : > { %1586 = vst [vmem:[#allocation2] sm:$0xff] %v1584_v14 }
 0x483   : > { %1592 = vst [vmem:[#allocation16] sm:$0xff] %v1584_v14  ;;  %v2362_v1 = vpack.c.bf16 %v1421_v34, %v1420_v61 }
 0x484   : > { %1593 = vst [vmem:[#allocation16 + $0x8] sm:$0xff] %v1585_v11 }
 0x485   : > { %2363 = vst [vmem:[#allocation17] sm:$0xff] %v2362_v1  }
 0x486 PF: > { %p2433_p4 = scmp.eq.s32.totalorder %s2959_s19, 1  ;;  %s3351_s10 = sld [smem:[#allocation32_spill]] }
 0x487   : > { %s2867_s5 = smov [#allocation16]   ;;  %s2868_s16 = smov 128  }
 0x488   : > { %s1604_s15 = sshll.u32 %s2867_s5, 4  ;;  %s2869_s23 = smov 8   ;;  %s1605_s15 = int_to_ptr.vmem [resolvable:$true] %s1604_s15 }
 0x489   : > { %s2870_s29 = smov [#allocation17]   ;;  %s3352_s13 = sld [smem:[#allocation33_spill]] }
 0x48a   : > { %s1621_s11 = sshll.u32 %s2870_s29, 4  ;;  %s2871_s9 = smov 64   ;;  %s1622_s11 = int_to_ptr.vmem [resolvable:$true] %s1621_s11 }
 0x48b   : > { %s2872_s18 = smov 4  }
 0x48c   : > { %s1606_s27 = sshll.u32 %s3351_s10, 4  ;;  %s1607_s27 = int_to_ptr.hbm [resolvable:$true] %s1606_s27 }
 0x48d   : > { %2392 = dma.vmem_to_hbm [thread:$0]  (%p2433_p4), %s1605_s15, 256, %s1607_s27, [#allocation6], %s2868_s16, %s2868_s16, %s2869_s23  }
 0x48f   : > { %s1623_s21 = sshll.u32 %s3352_s13, 4  ;;  %s1624_s21 = int_to_ptr.hbm [resolvable:$true] %s1623_s21 }
 0x490   : > { %2394 = dma.vmem_to_hbm [thread:$0]  (%p2433_p4), %s1622_s11, 128, %s1624_s21, [#allocation18], %s2871_s9, %s2871_s9, %s2872_s18  }
 0x491   : > { %2826 = dma.done.wait (%p2433_p4), [#allocation6], 256  }
 0x492   : > { %2828 = vsyncadd (%p2433_p4), [#allocation6], 4294967040 }
 0x493   : > { %2830 = dma.done.wait (%p2433_p4), [#allocation18], 128  }
 0x494   : > { %2832 = vsyncadd (%p2433_p4), [#allocation18], 4294967168 }
 0x495 PF: > { %s3353_s28 = sld [smem:[#allocation26_spill]]  ;;  %s3357_s13 = smov %s2839_s14 }
 0x496   : > { %s3354_s24 = sld [smem:[#allocation25_spill]]  ;;  %s3359_s16 = smov %s2851_s17 }
 0x497   : > { %s3355_s15 = sld [smem:[#allocation28_spill]] }
 0x498   : > { %s3356_s20 = sld [smem:[#allocation27_spill]] }
 0x49b   : > { %s29_s18 = sadd.s32 1, %s3353_s28  }
 0x49c   : > { %p26_p5 = scmp.ge.s32.totalorder %s29_s18, 4   ;;  %s3358_s14 = smov %s3354_s24 }
 0x49e   : > { %s3360_s17 = smov %s3356_s20  ;;  %28 = sbr.rel (!%p26_p5) target bundleno = 15 (0xf), region = 154 }
 0x4a3   :  { %1645 = vsyncpa [#allocation5], 1 }
 0x4a4   :  { %1647 = vsyncpa [#allocation5 + $0x1], 1 }
 0x4a5   :  { %1648 = vsyncpa [#allocation8], 1 }
 0x4a6   :  { %1649 = vsyncpa [#allocation11], 1 }
 0x4a7   :  { %1650 = vsyncpa [#allocation14], 1 }
 0x4a8   :  { %1652 = vsyncpa [#allocation14 + $0x1], 1 }
 0x4a9   :  { %1653 = vsyncpa [#allocation6], 1 }
 0x4aa   :  { %1655 = vsyncpa [#allocation6 + $0x1], 1 }
 0x4ab   :  { %1656 = vsyncpa [#allocation18], 1 }

</bundles_post_ra>
